<compile_context>
chip_gen: v7x
topology: tpu7x:2x2x1
jax: 0.10.0
libtpu: 0.0.40
codegen_flags: <defaults>
</compile_context>

<pallas_src>
import functools

import jax
import jax.numpy as jnp
from jax import lax
from jax.experimental import pallas as pl
from jax.experimental.pallas import tpu as pltpu


H = 128          # taille_H_LSTM == taille_vectorisation_mots
VOCAB = 256      # synthetic taille_vocabulaire (len(ds_paroles.mots_uniques))
T = 6            # taille_sequence
B = 8            # batch


def _lstm_fc_kernel(x_ref, h0_ref, c0_ref, wih_ref, whh_ref, b_ref,
                    wfc_ref, bfc_ref,
                    y_ref, hT_ref, cT_ref,
                    xg_sc, hs_sc,
                    *, t_len, batch, hidden):
    # (1) Input projection for ALL timesteps at once: hoists one of the two
    #     matmuls off the serial recurrence and uses T*B MXU rows in one pass.
    xg_sc[...] = (jnp.dot(x_ref[...], wih_ref[...],
                          preferred_element_type=jnp.float32)
                  + b_ref[...])

    whh = whh_ref[...]   # hoist weight read out of the loop

    # (2) Serial recurrence, fully unrolled (t_len is static & tiny).
    #     Gate order i, f, g, o (PyTorch convention).
    def step(t, carry):
        h, c = carry
        off = pl.multiple_of(t * batch, batch)
        gates = xg_sc[pl.ds(off, batch), :] + jnp.dot(
            h, whh, preferred_element_type=jnp.float32)
        if_act = jax.nn.sigmoid(gates[:, :2 * hidden])   # i|f in one EUP pass
        i_g = if_act[:, :hidden]
        f_g = if_act[:, hidden:]
        g_g = jnp.tanh(gates[:, 2 * hidden:3 * hidden])
        o_g = jax.nn.sigmoid(gates[:, 3 * hidden:])
        c_new = f_g * c + i_g * g_g
        h_new = o_g * jnp.tanh(c_new)
        hs_sc[pl.ds(off, batch), :] = h_new               # collect h_t rows
        return (h_new, c_new)

    h_last, c_last = lax.fori_loop(
        0, t_len, step, (h0_ref[...], c0_ref[...]), unroll=True)

    # (3) Batched fused Linear: one (T*B, H) @ (H, V) matmul + bias, written as
    #     a single lane-dense (T*B, V) slab instead of T tiny stores.
    y_ref[...] = (jnp.dot(hs_sc[...], wfc_ref[...],
                          preferred_element_type=jnp.float32)
                  + bfc_ref[...]).astype(y_ref.dtype)

    hT_ref[...] = h_last
    cT_ref[...] = c_last


@jax.jit
def modele_forward(lot_X, etat_0, params):
    """Embedding -> LSTM (1 layer) -> Linear, mirroring Modele.forward."""
    emb_table, w_ih, w_hh, b_ih, b_hh, w_fc, b_fc = (
        params["emb"], params["w_ih"], params["w_hh"],
        params["b_ih"], params["b_hh"], params["w_fc"], params["b_fc"])

    h0, c0 = etat_0                      # each (1, B, H)
    t_len, batch = lot_X.shape
    hidden = emb_table.shape[1]
    vocab = w_fc.shape[0]

    # Embedding lookup (glue; gather stays in plain JAX).
    x_emb = jnp.take(emb_table, lot_X, axis=0).astype(jnp.float32)   # (T, B, H)
    x_flat = x_emb.reshape(t_len * batch, hidden)                    # (T*B, H)

    # Pre-transpose weights so the kernel does (rows, H) @ (H, 4H) / (H, V).
    # Kept in f32: v5e has no bf16 VPU/EUP and f32 keeps the 1e-4 reference
    # tolerance intact; operand footprint is tiny (<1 MB) anyway.
    wih_t = w_ih.T                               # (H, 4H)
    whh_t = w_hh.T                               # (H, 4H)
    bias = (b_ih + b_hh).reshape(1, 4 * hidden)  # (1, 4H)
    wfc_t = w_fc.T                               # (H, V)
    bfc = b_fc.reshape(1, vocab)                 # (1, V)

    kernel = functools.partial(
        _lstm_fc_kernel, t_len=t_len, batch=batch, hidden=hidden)

    grid_spec = pltpu.PrefetchScalarGridSpec(
        num_scalar_prefetch=0,
        grid=(1,),                                # single kernel invocation
        in_specs=[
            pl.BlockSpec((t_len * batch, hidden), lambda i: (0, 0)),  # x_emb flat
            pl.BlockSpec((batch, hidden), lambda i: (0, 0)),          # h0
            pl.BlockSpec((batch, hidden), lambda i: (0, 0)),          # c0
            pl.BlockSpec((hidden, 4 * hidden), lambda i: (0, 0)),     # W_ih^T
            pl.BlockSpec((hidden, 4 * hidden), lambda i: (0, 0)),     # W_hh^T
            pl.BlockSpec((1, 4 * hidden), lambda i: (0, 0)),          # bias
            pl.BlockSpec((hidden, vocab), lambda i: (0, 0)),          # W_fc^T
            pl.BlockSpec((1, vocab), lambda i: (0, 0)),               # b_fc
        ],
        out_specs=[
            pl.BlockSpec((t_len * batch, vocab), lambda i: (0, 0)),   # logits slab
            pl.BlockSpec((batch, hidden), lambda i: (0, 0)),          # h_T
            pl.BlockSpec((batch, hidden), lambda i: (0, 0)),          # c_T
        ],
        scratch_shapes=[
            pltpu.VMEM((t_len * batch, 4 * hidden), jnp.float32),  # x @ W_ih^T + b
            pltpu.VMEM((t_len * batch, hidden), jnp.float32),      # collected h_t
        ],
    )

    y_flat, h_T, c_T = pl.pallas_call(
        kernel,
        out_shape=(
            jax.ShapeDtypeStruct((t_len * batch, vocab), jnp.float32),
            jax.ShapeDtypeStruct((batch, hidden), jnp.float32),
            jax.ShapeDtypeStruct((batch, hidden), jnp.float32),
        ),
        grid_spec=grid_spec,
        compiler_params=pltpu.CompilerParams(
            dimension_semantics=("arbitrary",)),   # sequential recurrence inside
    )(x_flat, h0[0], c0[0], wih_t, whh_t, bias, wfc_t, bfc)

    lot_Yt = y_flat.reshape(t_len, batch, vocab)
    return lot_Yt, (h_T[None], c_T[None])


def _reference_forward(lot_X, etat_0, params):
    """Pure-JAX reference (lax.scan) for correctness check."""
    emb_table, w_ih, w_hh, b_ih, b_hh, w_fc, b_fc = (
        params["emb"], params["w_ih"], params["w_hh"],
        params["b_ih"], params["b_hh"], params["w_fc"], params["b_fc"])
    x_emb = jnp.take(emb_table, lot_X, axis=0).astype(jnp.float32)
    h0, c0 = etat_0

    def step(carry, x_t):
        h, c = carry
        gates = x_t @ w_ih.T + h @ w_hh.T + b_ih + b_hh
        i_g = jax.nn.sigmoid(gates[:, 0 * H:1 * H])
        f_g = jax.nn.sigmoid(gates[:, 1 * H:2 * H])
        g_g = jnp.tanh(gates[:, 2 * H:3 * H])
        o_g = jax.nn.sigmoid(gates[:, 3 * H:4 * H])
        c_n = f_g * c + i_g * g_g
        h_n = o_g * jnp.tanh(c_n)
        return (h_n, c_n), h_n

    (h_T, c_T), hs = jax.lax.scan(step, (h0[0], c0[0]), x_emb)
    ys = hs @ w_fc.T + b_fc
    return ys, (h_T[None], c_T[None])


def init_params(key):
    ks = jax.random.split(key, 7)
    scale = 1.0 / jnp.sqrt(H)
    return {
        "emb": jax.random.normal(ks[0], (VOCAB, H), jnp.float32),
        "w_ih": jax.random.uniform(ks[1], (4 * H, H), jnp.float32, -scale, scale),
        "w_hh": jax.random.uniform(ks[2], (4 * H, H), jnp.float32, -scale, scale),
        "b_ih": jax.random.uniform(ks[3], (4 * H,), jnp.float32, -scale, scale),
        "b_hh": jax.random.uniform(ks[4], (4 * H,), jnp.float32, -scale, scale),
        "w_fc": jax.random.uniform(ks[5], (VOCAB, H), jnp.float32, -scale, scale),
        "b_fc": jax.random.uniform(ks[6], (VOCAB,), jnp.float32, -scale, scale),
    }
    # TODO(synk): nn.LSTM(dropout=0.2) with num_layers=1 has no effect (inter-layer
    # dropout only), so it is intentionally omitted.


if __name__ == "__main__":
    key = jax.random.PRNGKey(0)
    k_params, k_x = jax.random.split(key)

    params = init_params(k_params)

    lot_X = jax.random.randint(k_x, (T, B), 0, VOCAB, dtype=jnp.int32)
    etat_0 = (jnp.zeros((1, B, H), jnp.float32),
              jnp.zeros((1, B, H), jnp.float32))   # initializer_etat

    lot_Yt, (h_T, c_T) = modele_forward(lot_X, etat_0, params)
    jax.block_until_ready((lot_Yt, h_T, c_T))

    y_ref, (h_ref, c_ref) = _reference_forward(lot_X, etat_0, params)
    assert lot_Yt.shape == (T, B, VOCAB)
    assert h_T.shape == (1, B, H) and c_T.shape == (1, B, H)
    assert jnp.allclose(lot_Yt, y_ref, atol=1e-4, rtol=1e-4)
    assert jnp.allclose(h_T, h_ref, atol=1e-4, rtol=1e-4)
    assert jnp.allclose(c_T, c_ref, atol=1e-4, rtol=1e-4)

    print("KERNEL_OK")
</pallas_src>

<mosaic_0001>
module attributes {stable_mosaic.version = 11 : i64} {
  func.func @_lstm_fc_kernel(%arg0: i32, %arg1: memref<48x128xf32, #tpu.memory_space<vmem>>, %arg2: memref<8x128xf32, #tpu.memory_space<vmem>>, %arg3: memref<8x128xf32, #tpu.memory_space<vmem>>, %arg4: memref<128x512xf32, #tpu.memory_space<vmem>>, %arg5: memref<128x512xf32, #tpu.memory_space<vmem>>, %arg6: memref<1x512xf32, #tpu.memory_space<vmem>>, %arg7: memref<128x256xf32, #tpu.memory_space<vmem>>, %arg8: memref<1x256xf32, #tpu.memory_space<vmem>>, %arg9: memref<48x256xf32, #tpu.memory_space<vmem>>, %arg10: memref<8x128xf32, #tpu.memory_space<vmem>>, %arg11: memref<8x128xf32, #tpu.memory_space<vmem>>, %arg12: memref<48x512xf32, #tpu.memory_space<vmem>>, %arg13: memref<48x128xf32, #tpu.memory_space<vmem>>) attributes {dimension_semantics = [#tpu.dimension_semantics<arbitrary>], iteration_bounds = array<i64: 1>, scalar_prefetch = 0 : i64, scratch_operands = 2 : i64, tpu.core_type = #tpu.core_type<tc>, window_params = [{pipeline_mode = #tpu.pipeline_mode<synchronous>, transform_indices = @transform_0, window_bounds = array<i64: 48, 128>}, {pipeline_mode = #tpu.pipeline_mode<synchronous>, transform_indices = @transform_1, window_bounds = array<i64: 8, 128>}, {pipeline_mode = #tpu.pipeline_mode<synchronous>, transform_indices = @transform_2, window_bounds = array<i64: 8, 128>}, {pipeline_mode = #tpu.pipeline_mode<synchronous>, transform_indices = @transform_3, window_bounds = array<i64: 128, 512>}, {pipeline_mode = #tpu.pipeline_mode<synchronous>, transform_indices = @transform_4, window_bounds = array<i64: 128, 512>}, {pipeline_mode = #tpu.pipeline_mode<synchronous>, transform_indices = @transform_5, window_bounds = array<i64: 1, 512>}, {pipeline_mode = #tpu.pipeline_mode<synchronous>, transform_indices = @transform_6, window_bounds = array<i64: 128, 256>}, {pipeline_mode = #tpu.pipeline_mode<synchronous>, transform_indices = @transform_7, window_bounds = array<i64: 1, 256>}, {pipeline_mode = #tpu.pipeline_mode<synchronous>, transform_indices = @transform_8, window_bounds = array<i64: 48, 256>}, {pipeline_mode = #tpu.pipeline_mode<synchronous>, transform_indices = @transform_9, window_bounds = array<i64: 8, 128>}, {pipeline_mode = #tpu.pipeline_mode<synchronous>, transform_indices = @transform_10, window_bounds = array<i64: 8, 128>}]} {
    %c0 = arith.constant 0 : index
    %c0_0 = arith.constant 0 : index
    %0 = vector.load %arg1[%c0, %c0_0] : memref<48x128xf32, #tpu.memory_space<vmem>>, vector<48x128xf32>
    %c0_1 = arith.constant 0 : index
    %c0_2 = arith.constant 0 : index
    %1 = vector.load %arg4[%c0_1, %c0_2] : memref<128x512xf32, #tpu.memory_space<vmem>>, vector<128x512xf32>
    %cst = arith.constant dense<0.000000e+00> : vector<48x512xf32>
    %2 = tpu.matmul %0, %1, %cst {dimension_numbers = #tpu.dot_dimension_numbers<[1], [0], [0], [1], [0, 0, 1, 1], [], []>} : vector<48x128xf32>, vector<128x512xf32>, vector<48x512xf32> -> vector<48x512xf32>
    %c0_3 = arith.constant 0 : index
    %c0_4 = arith.constant 0 : index
    %3 = vector.load %arg6[%c0_3, %c0_4] : memref<1x512xf32, #tpu.memory_space<vmem>>, vector<1x512xf32>
    %4 = vector.broadcast %3 : vector<1x512xf32> to vector<48x512xf32>
    %5 = arith.addf %2, %4 : vector<48x512xf32>
    %c0_5 = arith.constant 0 : index
    %c0_6 = arith.constant 0 : index
    %6 = vector.load %arg12[%c0_5, %c0_6] : memref<48x512xf32, #tpu.memory_space<vmem>>, vector<48x512xf32>
    tpu.vector_store %arg12[%c0_5, %c0_6], %5 {strides = array<i32>} : memref<48x512xf32, #tpu.memory_space<vmem>>, vector<48x512xf32>,
    %c0_7 = arith.constant 0 : index
    %c0_8 = arith.constant 0 : index
    %7 = vector.load %arg5[%c0_7, %c0_8] : memref<128x512xf32, #tpu.memory_space<vmem>>, vector<128x512xf32>
    %c0_9 = arith.constant 0 : index
    %c0_10 = arith.constant 0 : index
    %8 = vector.load %arg2[%c0_9, %c0_10] : memref<8x128xf32, #tpu.memory_space<vmem>>, vector<8x128xf32>
    %c0_11 = arith.constant 0 : index
    %c0_12 = arith.constant 0 : index
    %9 = vector.load %arg3[%c0_11, %c0_12] : memref<8x128xf32, #tpu.memory_space<vmem>>, vector<8x128xf32>
    %c0_i32 = arith.constant 0 : i32
    %c8_i32 = arith.constant 8 : i32
    %10 = arith.muli %c0_i32, %c8_i32 : i32
    %11 = tpu.assume_multiple %10, 8 : i32
    %12 = arith.index_cast %11 : i32 to index
    %c0_13 = arith.constant 0 : index
    %13 = vector.load %arg12[%12, %c0_13] : memref<48x512xf32, #tpu.memory_space<vmem>>, vector<8x512xf32>
    %cst_14 = arith.constant dense<0.000000e+00> : vector<8x512xf32>
    %14 = tpu.matmul %8, %7, %cst_14 {dimension_numbers = #tpu.dot_dimension_numbers<[1], [0], [0], [1], [0, 0, 1, 1], [], []>} : vector<8x128xf32>, vector<128x512xf32>, vector<8x512xf32> -> vector<8x512xf32>
    %15 = arith.addf %13, %14 : vector<8x512xf32>
    %16 = vector.extract_strided_slice %15 {offsets = [0, 0], sizes = [8, 256], strides = [1, 1]} : vector<8x512xf32> to vector<8x256xf32>
    %17 = arith.negf %16 : vector<8x256xf32>
    %18 = math.exp %17 : vector<8x256xf32>
    %cst_15 = arith.constant 1.000000e+00 : f32
    %19 = vector.broadcast %cst_15 : f32 to vector<8x256xf32>
    %20 = arith.addf %19, %18 : vector<8x256xf32>
    %21 = arith.divf %19, %20 : vector<8x256xf32>
    %22 = vector.extract_strided_slice %21 {offsets = [0, 0], sizes = [8, 128], strides = [1, 1]} : vector<8x256xf32> to vector<8x128xf32>
    %23 = vector.extract_strided_slice %21 {offsets = [0, 128], sizes = [8, 128], strides = [1, 1]} : vector<8x256xf32> to vector<8x128xf32>
    %24 = vector.extract_strided_slice %15 {offsets = [0, 256], sizes = [8, 128], strides = [1, 1]} : vector<8x512xf32> to vector<8x128xf32>
    %25 = math.tanh %24 : vector<8x128xf32>
    %26 = vector.extract_strided_slice %15 {offsets = [0, 384], sizes = [8, 128], strides = [1, 1]} : vector<8x512xf32> to vector<8x128xf32>
    %27 = arith.negf %26 : vector<8x128xf32>
    %28 = math.exp %27 : vector<8x128xf32>
    %cst_16 = arith.constant 1.000000e+00 : f32
    %29 = vector.broadcast %cst_16 : f32 to vector<8x128xf32>
    %30 = arith.addf %29, %28 : vector<8x128xf32>
    %31 = arith.divf %29, %30 : vector<8x128xf32>
    %32 = arith.mulf %23, %9 : vector<8x128xf32>
    %33 = arith.mulf %22, %25 : vector<8x128xf32>
    %34 = arith.addf %32, %33 : vector<8x128xf32>
    %35 = math.tanh %34 : vector<8x128xf32>
    %36 = arith.mulf %31, %35 : vector<8x128xf32>
    %37 = arith.index_cast %11 : i32 to index
    %c0_17 = arith.constant 0 : index
    %38 = vector.load %arg13[%37, %c0_17] : memref<48x128xf32, #tpu.memory_space<vmem>>, vector<8x128xf32>
    tpu.vector_store %arg13[%37, %c0_17], %36 {strides = array<i32>} : memref<48x128xf32, #tpu.memory_space<vmem>>, vector<8x128xf32>,
    %c1_i32 = arith.constant 1 : i32
    %c8_i32_18 = arith.constant 8 : i32
    %39 = arith.muli %c1_i32, %c8_i32_18 : i32
    %40 = tpu.assume_multiple %39, 8 : i32
    %41 = arith.index_cast %40 : i32 to index
    %c0_19 = arith.constant 0 : index
    %42 = vector.load %arg12[%41, %c0_19] : memref<48x512xf32, #tpu.memory_space<vmem>>, vector<8x512xf32>
    %cst_20 = arith.constant dense<0.000000e+00> : vector<8x512xf32>
    %43 = tpu.matmul %36, %7, %cst_20 {dimension_numbers = #tpu.dot_dimension_numbers<[1], [0], [0], [1], [0, 0, 1, 1], [], []>} : vector<8x128xf32>, vector<128x512xf32>, vector<8x512xf32> -> vector<8x512xf32>
    %44 = arith.addf %42, %43 : vector<8x512xf32>
    %45 = vector.extract_strided_slice %44 {offsets = [0, 0], sizes = [8, 256], strides = [1, 1]} : vector<8x512xf32> to vector<8x256xf32>
    %46 = arith.negf %45 : vector<8x256xf32>
    %47 = math.exp %46 : vector<8x256xf32>
    %cst_21 = arith.constant 1.000000e+00 : f32
    %48 = vector.broadcast %cst_21 : f32 to vector<8x256xf32>
    %49 = arith.addf %48, %47 : vector<8x256xf32>
    %50 = arith.divf %48, %49 : vector<8x256xf32>
    %51 = vector.extract_strided_slice %50 {offsets = [0, 0], sizes = [8, 128], strides = [1, 1]} : vector<8x256xf32> to vector<8x128xf32>
    %52 = vector.extract_strided_slice %50 {offsets = [0, 128], sizes = [8, 128], strides = [1, 1]} : vector<8x256xf32> to vector<8x128xf32>
    %53 = vector.extract_strided_slice %44 {offsets = [0, 256], sizes = [8, 128], strides = [1, 1]} : vector<8x512xf32> to vector<8x128xf32>
    %54 = math.tanh %53 : vector<8x128xf32>
    %55 = vector.extract_strided_slice %44 {offsets = [0, 384], sizes = [8, 128], strides = [1, 1]} : vector<8x512xf32> to vector<8x128xf32>
    %56 = arith.negf %55 : vector<8x128xf32>
    %57 = math.exp %56 : vector<8x128xf32>
    %cst_22 = arith.constant 1.000000e+00 : f32
    %58 = vector.broadcast %cst_22 : f32 to vector<8x128xf32>
    %59 = arith.addf %58, %57 : vector<8x128xf32>
    %60 = arith.divf %58, %59 : vector<8x128xf32>
    %61 = arith.mulf %52, %34 : vector<8x128xf32>
    %62 = arith.mulf %51, %54 : vector<8x128xf32>
    %63 = arith.addf %61, %62 : vector<8x128xf32>
    %64 = math.tanh %63 : vector<8x128xf32>
    %65 = arith.mulf %60, %64 : vector<8x128xf32>
    %66 = arith.index_cast %40 : i32 to index
    %c0_23 = arith.constant 0 : index
    %67 = vector.load %arg13[%66, %c0_23] : memref<48x128xf32, #tpu.memory_space<vmem>>, vector<8x128xf32>
    tpu.vector_store %arg13[%66, %c0_23], %65 {strides = array<i32>} : memref<48x128xf32, #tpu.memory_space<vmem>>, vector<8x128xf32>,
    %c2_i32 = arith.constant 2 : i32
    %c8_i32_24 = arith.constant 8 : i32
    %68 = arith.muli %c2_i32, %c8_i32_24 : i32
    %69 = tpu.assume_multiple %68, 8 : i32
    %70 = arith.index_cast %69 : i32 to index
    %c0_25 = arith.constant 0 : index
    %71 = vector.load %arg12[%70, %c0_25] : memref<48x512xf32, #tpu.memory_space<vmem>>, vector<8x512xf32>
    %cst_26 = arith.constant dense<0.000000e+00> : vector<8x512xf32>
    %72 = tpu.matmul %65, %7, %cst_26 {dimension_numbers = #tpu.dot_dimension_numbers<[1], [0], [0], [1], [0, 0, 1, 1], [], []>} : vector<8x128xf32>, vector<128x512xf32>, vector<8x512xf32> -> vector<8x512xf32>
    %73 = arith.addf %71, %72 : vector<8x512xf32>
    %74 = vector.extract_strided_slice %73 {offsets = [0, 0], sizes = [8, 256], strides = [1, 1]} : vector<8x512xf32> to vector<8x256xf32>
    %75 = arith.negf %74 : vector<8x256xf32>
    %76 = math.exp %75 : vector<8x256xf32>
    %cst_27 = arith.constant 1.000000e+00 : f32
    %77 = vector.broadcast %cst_27 : f32 to vector<8x256xf32>
    %78 = arith.addf %77, %76 : vector<8x256xf32>
    %79 = arith.divf %77, %78 : vector<8x256xf32>
    %80 = vector.extract_strided_slice %79 {offsets = [0, 0], sizes = [8, 128], strides = [1, 1]} : vector<8x256xf32> to vector<8x128xf32>
    %81 = vector.extract_strided_slice %79 {offsets = [0, 128], sizes = [8, 128], strides = [1, 1]} : vector<8x256xf32> to vector<8x128xf32>
    %82 = vector.extract_strided_slice %73 {offsets = [0, 256], sizes = [8, 128], strides = [1, 1]} : vector<8x512xf32> to vector<8x128xf32>
    %83 = math.tanh %82 : vector<8x128xf32>
    %84 = vector.extract_strided_slice %73 {offsets = [0, 384], sizes = [8, 128], strides = [1, 1]} : vector<8x512xf32> to vector<8x128xf32>
    %85 = arith.negf %84 : vector<8x128xf32>
    %86 = math.exp %85 : vector<8x128xf32>
    %cst_28 = arith.constant 1.000000e+00 : f32
    %87 = vector.broadcast %cst_28 : f32 to vector<8x128xf32>
    %88 = arith.addf %87, %86 : vector<8x128xf32>
    %89 = arith.divf %87, %88 : vector<8x128xf32>
    %90 = arith.mulf %81, %63 : vector<8x128xf32>
    %91 = arith.mulf %80, %83 : vector<8x128xf32>
    %92 = arith.addf %90, %91 : vector<8x128xf32>
    %93 = math.tanh %92 : vector<8x128xf32>
    %94 = arith.mulf %89, %93 : vector<8x128xf32>
    %95 = arith.index_cast %69 : i32 to index
    %c0_29 = arith.constant 0 : index
    %96 = vector.load %arg13[%95, %c0_29] : memref<48x128xf32, #tpu.memory_space<vmem>>, vector<8x128xf32>
    tpu.vector_store %arg13[%95, %c0_29], %94 {strides = array<i32>} : memref<48x128xf32, #tpu.memory_space<vmem>>, vector<8x128xf32>,
    %c3_i32 = arith.constant 3 : i32
    %c8_i32_30 = arith.constant 8 : i32
    %97 = arith.muli %c3_i32, %c8_i32_30 : i32
    %98 = tpu.assume_multiple %97, 8 : i32
    %99 = arith.index_cast %98 : i32 to index
    %c0_31 = arith.constant 0 : index
    %100 = vector.load %arg12[%99, %c0_31] : memref<48x512xf32, #tpu.memory_space<vmem>>, vector<8x512xf32>
    %cst_32 = arith.constant dense<0.000000e+00> : vector<8x512xf32>
    %101 = tpu.matmul %94, %7, %cst_32 {dimension_numbers = #tpu.dot_dimension_numbers<[1], [0], [0], [1], [0, 0, 1, 1], [], []>} : vector<8x128xf32>, vector<128x512xf32>, vector<8x512xf32> -> vector<8x512xf32>
    %102 = arith.addf %100, %101 : vector<8x512xf32>
    %103 = vector.extract_strided_slice %102 {offsets = [0, 0], sizes = [8, 256], strides = [1, 1]} : vector<8x512xf32> to vector<8x256xf32>
    %104 = arith.negf %103 : vector<8x256xf32>
    %105 = math.exp %104 : vector<8x256xf32>
    %cst_33 = arith.constant 1.000000e+00 : f32
    %106 = vector.broadcast %cst_33 : f32 to vector<8x256xf32>
    %107 = arith.addf %106, %105 : vector<8x256xf32>
    %108 = arith.divf %106, %107 : vector<8x256xf32>
    %109 = vector.extract_strided_slice %108 {offsets = [0, 0], sizes = [8, 128], strides = [1, 1]} : vector<8x256xf32> to vector<8x128xf32>
    %110 = vector.extract_strided_slice %108 {offsets = [0, 128], sizes = [8, 128], strides = [1, 1]} : vector<8x256xf32> to vector<8x128xf32>
    %111 = vector.extract_strided_slice %102 {offsets = [0, 256], sizes = [8, 128], strides = [1, 1]} : vector<8x512xf32> to vector<8x128xf32>
    %112 = math.tanh %111 : vector<8x128xf32>
    %113 = vector.extract_strided_slice %102 {offsets = [0, 384], sizes = [8, 128], strides = [1, 1]} : vector<8x512xf32> to vector<8x128xf32>
    %114 = arith.negf %113 : vector<8x128xf32>
    %115 = math.exp %114 : vector<8x128xf32>
    %cst_34 = arith.constant 1.000000e+00 : f32
    %116 = vector.broadcast %cst_34 : f32 to vector<8x128xf32>
    %117 = arith.addf %116, %115 : vector<8x128xf32>
    %118 = arith.divf %116, %117 : vector<8x128xf32>
    %119 = arith.mulf %110, %92 : vector<8x128xf32>
    %120 = arith.mulf %109, %112 : vector<8x128xf32>
    %121 = arith.addf %119, %120 : vector<8x128xf32>
    %122 = math.tanh %121 : vector<8x128xf32>
    %123 = arith.mulf %118, %122 : vector<8x128xf32>
    %124 = arith.index_cast %98 : i32 to index
    %c0_35 = arith.constant 0 : index
    %125 = vector.load %arg13[%124, %c0_35] : memref<48x128xf32, #tpu.memory_space<vmem>>, vector<8x128xf32>
    tpu.vector_store %arg13[%124, %c0_35], %123 {strides = array<i32>} : memref<48x128xf32, #tpu.memory_space<vmem>>, vector<8x128xf32>,
    %c4_i32 = arith.constant 4 : i32
    %c8_i32_36 = arith.constant 8 : i32
    %126 = arith.muli %c4_i32, %c8_i32_36 : i32
    %127 = tpu.assume_multiple %126, 8 : i32
    %128 = arith.index_cast %127 : i32 to index
    %c0_37 = arith.constant 0 : index
    %129 = vector.load %arg12[%128, %c0_37] : memref<48x512xf32, #tpu.memory_space<vmem>>, vector<8x512xf32>
    %cst_38 = arith.constant dense<0.000000e+00> : vector<8x512xf32>
    %130 = tpu.matmul %123, %7, %cst_38 {dimension_numbers = #tpu.dot_dimension_numbers<[1], [0], [0], [1], [0, 0, 1, 1], [], []>} : vector<8x128xf32>, vector<128x512xf32>, vector<8x512xf32> -> vector<8x512xf32>
    %131 = arith.addf %129, %130 : vector<8x512xf32>
    %132 = vector.extract_strided_slice %131 {offsets = [0, 0], sizes = [8, 256], strides = [1, 1]} : vector<8x512xf32> to vector<8x256xf32>
    %133 = arith.negf %132 : vector<8x256xf32>
    %134 = math.exp %133 : vector<8x256xf32>
    %cst_39 = arith.constant 1.000000e+00 : f32
    %135 = vector.broadcast %cst_39 : f32 to vector<8x256xf32>
    %136 = arith.addf %135, %134 : vector<8x256xf32>
    %137 = arith.divf %135, %136 : vector<8x256xf32>
    %138 = vector.extract_strided_slice %137 {offsets = [0, 0], sizes = [8, 128], strides = [1, 1]} : vector<8x256xf32> to vector<8x128xf32>
    %139 = vector.extract_strided_slice %137 {offsets = [0, 128], sizes = [8, 128], strides = [1, 1]} : vector<8x256xf32> to vector<8x128xf32>
    %140 = vector.extract_strided_slice %131 {offsets = [0, 256], sizes = [8, 128], strides = [1, 1]} : vector<8x512xf32> to vector<8x128xf32>
    %141 = math.tanh %140 : vector<8x128xf32>
    %142 = vector.extract_strided_slice %131 {offsets = [0, 384], sizes = [8, 128], strides = [1, 1]} : vector<8x512xf32> to vector<8x128xf32>
    %143 = arith.negf %142 : vector<8x128xf32>
    %144 = math.exp %143 : vector<8x128xf32>
    %cst_40 = arith.constant 1.000000e+00 : f32
    %145 = vector.broadcast %cst_40 : f32 to vector<8x128xf32>
    %146 = arith.addf %145, %144 : vector<8x128xf32>
    %147 = arith.divf %145, %146 : vector<8x128xf32>
    %148 = arith.mulf %139, %121 : vector<8x128xf32>
    %149 = arith.mulf %138, %141 : vector<8x128xf32>
    %150 = arith.addf %148, %149 : vector<8x128xf32>
    %151 = math.tanh %150 : vector<8x128xf32>
    %152 = arith.mulf %147, %151 : vector<8x128xf32>
    %153 = arith.index_cast %127 : i32 to index
    %c0_41 = arith.constant 0 : index
    %154 = vector.load %arg13[%153, %c0_41] : memref<48x128xf32, #tpu.memory_space<vmem>>, vector<8x128xf32>
    tpu.vector_store %arg13[%153, %c0_41], %152 {strides = array<i32>} : memref<48x128xf32, #tpu.memory_space<vmem>>, vector<8x128xf32>,
    %c5_i32 = arith.constant 5 : i32
    %c8_i32_42 = arith.constant 8 : i32
    %155 = arith.muli %c5_i32, %c8_i32_42 : i32
    %156 = tpu.assume_multiple %155, 8 : i32
    %157 = arith.index_cast %156 : i32 to index
    %c0_43 = arith.constant 0 : index
    %158 = vector.load %arg12[%157, %c0_43] : memref<48x512xf32, #tpu.memory_space<vmem>>, vector<8x512xf32>
    %cst_44 = arith.constant dense<0.000000e+00> : vector<8x512xf32>
    %159 = tpu.matmul %152, %7, %cst_44 {dimension_numbers = #tpu.dot_dimension_numbers<[1], [0], [0], [1], [0, 0, 1, 1], [], []>} : vector<8x128xf32>, vector<128x512xf32>, vector<8x512xf32> -> vector<8x512xf32>
    %160 = arith.addf %158, %159 : vector<8x512xf32>
    %161 = vector.extract_strided_slice %160 {offsets = [0, 0], sizes = [8, 256], strides = [1, 1]} : vector<8x512xf32> to vector<8x256xf32>
    %162 = arith.negf %161 : vector<8x256xf32>
    %163 = math.exp %162 : vector<8x256xf32>
    %cst_45 = arith.constant 1.000000e+00 : f32
    %164 = vector.broadcast %cst_45 : f32 to vector<8x256xf32>
    %165 = arith.addf %164, %163 : vector<8x256xf32>
    %166 = arith.divf %164, %165 : vector<8x256xf32>
    %167 = vector.extract_strided_slice %166 {offsets = [0, 0], sizes = [8, 128], strides = [1, 1]} : vector<8x256xf32> to vector<8x128xf32>
    %168 = vector.extract_strided_slice %166 {offsets = [0, 128], sizes = [8, 128], strides = [1, 1]} : vector<8x256xf32> to vector<8x128xf32>
    %169 = vector.extract_strided_slice %160 {offsets = [0, 256], sizes = [8, 128], strides = [1, 1]} : vector<8x512xf32> to vector<8x128xf32>
    %170 = math.tanh %169 : vector<8x128xf32>
    %171 = vector.extract_strided_slice %160 {offsets = [0, 384], sizes = [8, 128], strides = [1, 1]} : vector<8x512xf32> to vector<8x128xf32>
    %172 = arith.negf %171 : vector<8x128xf32>
    %173 = math.exp %172 : vector<8x128xf32>
    %cst_46 = arith.constant 1.000000e+00 : f32
    %174 = vector.broadcast %cst_46 : f32 to vector<8x128xf32>
    %175 = arith.addf %174, %173 : vector<8x128xf32>
    %176 = arith.divf %174, %175 : vector<8x128xf32>
    %177 = arith.mulf %168, %150 : vector<8x128xf32>
    %178 = arith.mulf %167, %170 : vector<8x128xf32>
    %179 = arith.addf %177, %178 : vector<8x128xf32>
    %180 = math.tanh %179 : vector<8x128xf32>
    %181 = arith.mulf %176, %180 : vector<8x128xf32>
    %182 = arith.index_cast %156 : i32 to index
    %c0_47 = arith.constant 0 : index
    %183 = vector.load %arg13[%182, %c0_47] : memref<48x128xf32, #tpu.memory_space<vmem>>, vector<8x128xf32>
    tpu.vector_store %arg13[%182, %c0_47], %181 {strides = array<i32>} : memref<48x128xf32, #tpu.memory_space<vmem>>, vector<8x128xf32>,
    %c6_i32 = arith.constant 6 : i32
    %c0_48 = arith.constant 0 : index
    %c0_49 = arith.constant 0 : index
    %184 = vector.load %arg13[%c0_48, %c0_49] : memref<48x128xf32, #tpu.memory_space<vmem>>, vector<48x128xf32>
    %c0_50 = arith.constant 0 : index
    %c0_51 = arith.constant 0 : index
    %185 = vector.load %arg7[%c0_50, %c0_51] : memref<128x256xf32, #tpu.memory_space<vmem>>, vector<128x256xf32>
    %cst_52 = arith.constant dense<0.000000e+00> : vector<48x256xf32>
    %186 = tpu.matmul %184, %185, %cst_52 {dimension_numbers = #tpu.dot_dimension_numbers<[1], [0], [0], [1], [0, 0, 1, 1], [], []>} : vector<48x128xf32>, vector<128x256xf32>, vector<48x256xf32> -> vector<48x256xf32>
    %c0_53 = arith.constant 0 : index
    %c0_54 = arith.constant 0 : index
    %187 = vector.load %arg8[%c0_53, %c0_54] : memref<1x256xf32, #tpu.memory_space<vmem>>, vector<1x256xf32>
    %188 = vector.broadcast %187 : vector<1x256xf32> to vector<48x256xf32>
    %189 = arith.addf %186, %188 : vector<48x256xf32>
    %c0_55 = arith.constant 0 : index
    %c0_56 = arith.constant 0 : index
    %190 = vector.load %arg9[%c0_55, %c0_56] : memref<48x256xf32, #tpu.memory_space<vmem>>, vector<48x256xf32>
    tpu.vector_store %arg9[%c0_55, %c0_56], %189 {strides = array<i32>} : memref<48x256xf32, #tpu.memory_space<vmem>>, vector<48x256xf32>,
    %c0_57 = arith.constant 0 : index
    %c0_58 = arith.constant 0 : index
    %191 = vector.load %arg10[%c0_57, %c0_58] : memref<8x128xf32, #tpu.memory_space<vmem>>, vector<8x128xf32>
    tpu.vector_store %arg10[%c0_57, %c0_58], %181 {strides = array<i32>} : memref<8x128xf32, #tpu.memory_space<vmem>>, vector<8x128xf32>,
    %c0_59 = arith.constant 0 : index
    %c0_60 = arith.constant 0 : index
    %192 = vector.load %arg11[%c0_59, %c0_60] : memref<8x128xf32, #tpu.memory_space<vmem>>, vector<8x128xf32>
    tpu.vector_store %arg11[%c0_59, %c0_60], %179 {strides = array<i32>} : memref<8x128xf32, #tpu.memory_space<vmem>>, vector<8x128xf32>,
    return
  }
  func.func @transform_0(%arg0: i32) -> (i32, i32) {
    %c0_i32 = arith.constant 0 : i32
    %c0_i32_0 = arith.constant 0 : i32
    %c0_i32_1 = arith.constant 0 : i32
    return %c0_i32, %c0_i32_0 : i32, i32
  }
  func.func @transform_1(%arg0: i32) -> (i32, i32) {
    %c0_i32 = arith.constant 0 : i32
    %c0_i32_0 = arith.constant 0 : i32
    %c0_i32_1 = arith.constant 0 : i32
    return %c0_i32, %c0_i32_0 : i32, i32
  }
  func.func @transform_2(%arg0: i32) -> (i32, i32) {
    %c0_i32 = arith.constant 0 : i32
    %c0_i32_0 = arith.constant 0 : i32
    %c0_i32_1 = arith.constant 0 : i32
    return %c0_i32, %c0_i32_0 : i32, i32
  }
  func.func @transform_3(%arg0: i32) -> (i32, i32) {
    %c0_i32 = arith.constant 0 : i32
    %c0_i32_0 = arith.constant 0 : i32
    %c0_i32_1 = arith.constant 0 : i32
    return %c0_i32, %c0_i32_0 : i32, i32
  }
  func.func @transform_4(%arg0: i32) -> (i32, i32) {
    %c0_i32 = arith.constant 0 : i32
    %c0_i32_0 = arith.constant 0 : i32
    %c0_i32_1 = arith.constant 0 : i32
    return %c0_i32, %c0_i32_0 : i32, i32
  }
  func.func @transform_5(%arg0: i32) -> (i32, i32) {
    %c0_i32 = arith.constant 0 : i32
    %c0_i32_0 = arith.constant 0 : i32
    %c0_i32_1 = arith.constant 0 : i32
    return %c0_i32, %c0_i32_0 : i32, i32
  }
  func.func @transform_6(%arg0: i32) -> (i32, i32) {
    %c0_i32 = arith.constant 0 : i32
    %c0_i32_0 = arith.constant 0 : i32
    %c0_i32_1 = arith.constant 0 : i32
    return %c0_i32, %c0_i32_0 : i32, i32
  }
  func.func @transform_7(%arg0: i32) -> (i32, i32) {
    %c0_i32 = arith.constant 0 : i32
    %c0_i32_0 = arith.constant 0 : i32
    %c0_i32_1 = arith.constant 0 : i32
    return %c0_i32, %c0_i32_0 : i32, i32
  }
  func.func @transform_8(%arg0: i32) -> (i32, i32) {
    %c0_i32 = arith.constant 0 : i32
    %c0_i32_0 = arith.constant 0 : i32
    %c0_i32_1 = arith.constant 0 : i32
    return %c0_i32, %c0_i32_0 : i32, i32
  }
  func.func @transform_9(%arg0: i32) -> (i32, i32) {
    %c0_i32 = arith.constant 0 : i32
    %c0_i32_0 = arith.constant 0 : i32
    %c0_i32_1 = arith.constant 0 : i32
    return %c0_i32, %c0_i32_0 : i32, i32
  }
  func.func @transform_10(%arg0: i32) -> (i32, i32) {
    %c0_i32 = arith.constant 0 : i32
    %c0_i32_0 = arith.constant 0 : i32
    %c0_i32_1 = arith.constant 0 : i32
    return %c0_i32, %c0_i32_0 : i32, i32
  }
}

</mosaic_0001>

<bundles_post_ra>
// kernel: modele_forward.1
= control target key start
LH: loop header
LB: loop body
LE: loop exit
PB: predicated region body
PF: predicated region fallthrough
CT: control target
= control target key end

     0   :  { %16 = vsyncpa [#allocation5], 0  ;;  %v2422_v7 = vmov 0.0   ;;  %s3464_s0 = inlined_call_operand.vmem [shape: f32[48,128], index: 0, kind: input, shape index: {}]   ;;  %s3465_s1 = inlined_call_operand.vmem [shape: f32[8,128], index: 1, kind: input, shape index: {}]   ;;  %s3466_s2 = inlined_call_operand.vmem [shape: f32[8,128], index: 2, kind: input, shape index: {}]   ;;  %s3467_s3 = inlined_call_operand.vmem [shape: f32[128,512], index: 3, kind: input, shape index: {}]   ;;  %s3468_s4 = inlined_call_operand.vmem [shape: f32[128,512], index: 4, kind: input, shape index: {}]   ;;  %s3469_s5 = inlined_call_operand.vmem [shape: f32[1,512], index: 5, kind: input, shape index: {}]   ;;  %s3470_s6 = inlined_call_operand.vmem [shape: f32[128,256], index: 6, kind: input, shape index: {}]   ;;  %s3471_s7 = inlined_call_operand.vmem [shape: f32[1,256], index: 7, kind: input, shape index: {}]   ;;  %s3472_s8 = inlined_call_operand.hbm [shape: f32[48,256], index: 8, kind: output, shape index: {0}]   ;;  %s3473_s9 = inlined_call_operand.hbm [shape: f32[8,128], index: 9, kind: output, shape index: {1}]   ;;  %s3474_s10 = inlined_call_operand.hbm [shape: f32[8,128], index: 10, kind: output, shape index: {2}]  }
   0x1   :  { %v41_v0 = vld [vmem:[%s3467_s3 + $0x8] sm:$0xff]  ;;  %v40_v2 = vld [vmem:[%s3467_s3] sm:$0xff]  ;;  %190 = vmatprep.mubr.f32.mxu1 %v2422_v7  ;;  %489 = vmatprep.mubr.f32.mxu0 %v2422_v7 }
   0x2   :  { %v45_v1 = vld [vmem:[%s3467_s3 + $0x28] sm:$0xff]  ;;  %v44_v4 = vld [vmem:[%s3467_s3 + $0x20] sm:$0xff] }
   0x3   :  { %v1722_v3 = vpack.c.bf16 %v45_v1, %v41_v0  ;;  %v353_v5 = vld [vmem:[%s3468_s4 + $0x8] sm:$0xff]  ;;  %v1724_v8 = vpack.c.bf16 %v44_v4, %v40_v2  ;;  %v352_v10 = vld [vmem:[%s3468_s4] sm:$0xff] }
   0x4   :  { %v357_v6 = vld [vmem:[%s3468_s4 + $0x28] sm:$0xff]  ;;  %v356_v11 = vld [vmem:[%s3468_s4 + $0x20] sm:$0xff] }
   0x5   :  { %v2503_v9 = vpack.c.bf16 %v357_v6, %v353_v5  ;;  %v49_v12 = vld [vmem:[%s3467_s3 + $0x48] sm:$0xff]  ;;  %1723 = vmatprep.subr.bf16.mxu1 %v1722_v3  ;;  %v2514_v13 = vpack.c.bf16 %v356_v11, %v352_v10  ;;  %v48_v15 = vld [vmem:[%s3467_s3 + $0x40] sm:$0xff] }
   0x6   :  { %v53_v14 = vld [vmem:[%s3467_s3 + $0x68] sm:$0xff]  ;;  %v52_v16 = vld [vmem:[%s3467_s3 + $0x60] sm:$0xff]  ;;  %1725 = vmatpush1.bf16.msra.mxu1 %v1724_v8 }
   0x7   :  { %1787 = vmatprep.subr.bf16.mxu0 %v2503_v9  ;;  %v1726_v17 = vpack.c.bf16 %v53_v14, %v49_v12  ;;  %v1728_v18 = vpack.c.bf16 %v52_v16, %v48_v15  ;;  %v361_v19 = vld [vmem:[%s3468_s4 + $0x48] sm:$0xff]  ;;  %v360_v21 = vld [vmem:[%s3468_s4 + $0x40] sm:$0xff] }
   0x8   :  { %v365_v20 = vld [vmem:[%s3468_s4 + $0x68] sm:$0xff]  ;;  %1789 = vmatpush1.bf16.msra.mxu0 %v2514_v13  ;;  %v364_v23 = vld [vmem:[%s3468_s4 + $0x60] sm:$0xff] }
   0x9   :  { %v2536_v22 = vpack.c.bf16 %v365_v20, %v361_v19  ;;  %v57_v24 = vld [vmem:[%s3467_s3 + $0x88] sm:$0xff]  ;;  %1727 = vmatprep.subr.bf16.mxu1 %v1726_v17  ;;  %v2547_v26 = vpack.c.bf16 %v364_v23, %v360_v21  ;;  %v56_v28 = vld [vmem:[%s3467_s3 + $0x80] sm:$0xff] }
   0xa   :  { %v61_v25 = vld [vmem:[%s3467_s3 + $0xa8] sm:$0xff]  ;;  %v60_v29 = vld [vmem:[%s3467_s3 + $0xa0] sm:$0xff]  ;;  %1729 = vmatpush1.bf16.msra.mxu1 %v1728_v18 }
   0xb   :  { %v1730_v27 = vpack.c.bf16 %v61_v25, %v57_v24  ;;  %v369_v30 = vld [vmem:[%s3468_s4 + $0x88] sm:$0xff]  ;;  %1791 = vmatprep.subr.bf16.mxu0 %v2536_v22  ;;  %v368_v32 = vld [vmem:[%s3468_s4 + $0x80] sm:$0xff]  ;;  %v1732_v34 = vpack.c.bf16 %v60_v29, %v56_v28 }
   0xc   :  { %v373_v31 = vld [vmem:[%s3468_s4 + $0xa8] sm:$0xff]  ;;  %v372_v33 = vld [vmem:[%s3468_s4 + $0xa0] sm:$0xff]  ;;  %1793 = vmatpush1.bf16.msra.mxu0 %v2547_v26 }
   0xd   :  { %v2568_v35 = vpack.c.bf16 %v373_v31, %v369_v30  ;;  %v65_v36 = vld [vmem:[%s3467_s3 + $0xc8] sm:$0xff]  ;;  %v64_v38 = vld [vmem:[%s3467_s3 + $0xc0] sm:$0xff]  ;;  %1731 = vmatprep.subr.bf16.mxu1 %v1730_v27  ;;  %v2580_v39 = vpack.c.bf16 %v372_v33, %v368_v32 }
   0xe   :  { %v69_v37 = vld [vmem:[%s3467_s3 + $0xe8] sm:$0xff]  ;;  %v68_v41 = vld [vmem:[%s3467_s3 + $0xe0] sm:$0xff]  ;;  %1733 = vmatpush1.bf16.msra.mxu1 %v1732_v34 }
   0xf   :  { %v1734_v40 = vpack.c.bf16 %v69_v37, %v65_v36  ;;  %v377_v42 = vld [vmem:[%s3468_s4 + $0xc8] sm:$0xff]  ;;  %1795 = vmatprep.subr.bf16.mxu0 %v2568_v35  ;;  %v376_v45 = vld [vmem:[%s3468_s4 + $0xc0] sm:$0xff]  ;;  %v1736_v49 = vpack.c.bf16 %v68_v41, %v64_v38  ;;  %v43_v37 = vld [vmem:[%s3467_s3 + $0x18] sm:$0xff] }
  0x10   :  { %v381_v43 = vld [vmem:[%s3468_s4 + $0xe8] sm:$0xff]  ;;  %v380_v46 = vld [vmem:[%s3468_s4 + $0xe0] sm:$0xff]  ;;  %1797 = vmatpush1.bf16.msra.mxu0 %v2580_v39  ;;  %v47_v38 = vld [vmem:[%s3467_s3 + $0x38] sm:$0xff] }
  0x11   :  { %v2592_v44 = vpack.c.bf16 %v381_v43, %v377_v42  ;;  %v73_v47 = vld [vmem:[%s3467_s3 + $0x108] sm:$0xff]  ;;  %1735 = vmatprep.subr.bf16.mxu1 %v1734_v40  ;;  %v2613_v52 = vpack.c.bf16 %v380_v46, %v376_v45  ;;  %v72_v54 = vld [vmem:[%s3467_s3 + $0x100] sm:$0xff]  ;;  %v1754_v42 = vpack.c.bf16 %v47_v38, %v43_v37  ;;  %v42_v43 = vld [vmem:[%s3467_s3 + $0x10] sm:$0xff] }
  0x12   :  { %v77_v48 = vld [vmem:[%s3467_s3 + $0x128] sm:$0xff]  ;;  %v76_v55 = vld [vmem:[%s3467_s3 + $0x120] sm:$0xff]  ;;  %1737 = vmatpush1.bf16.msra.mxu1 %v1736_v49  ;;  %v46_v45 = vld [vmem:[%s3467_s3 + $0x30] sm:$0xff] }
  0x13   :  { %v385_v50 = vld [vmem:[%s3468_s4 + $0x108] sm:$0xff]  ;;  %v1738_v53 = vpack.c.bf16 %v77_v48, %v73_v47  ;;  %v384_v56 = vld [vmem:[%s3468_s4 + $0x100] sm:$0xff]  ;;  %1799 = vmatprep.subr.bf16.mxu0 %v2592_v44  ;;  %v1740_v63 = vpack.c.bf16 %v76_v55, %v72_v54  ;;  %v51_v46 = vld [vmem:[%s3467_s3 + $0x58] sm:$0xff]  ;;  %v1756_v49 = vpack.c.bf16 %v46_v45, %v42_v43 }
  0x14   :  { %v389_v51 = vld [vmem:[%s3468_s4 + $0x128] sm:$0xff]  ;;  %v388_v58 = vld [vmem:[%s3468_s4 + $0x120] sm:$0xff]  ;;  %1801 = vmatpush1.bf16.msra.mxu0 %v2613_v52  ;;  %v55_v47 = vld [vmem:[%s3467_s3 + $0x78] sm:$0xff] }
  0x15   :  { %v2625_v57 = vpack.c.bf16 %v389_v51, %v385_v50  ;;  %v81_v59 = vld [vmem:[%s3467_s3 + $0x148] sm:$0xff]  ;;  %1739 = vmatprep.subr.bf16.mxu1 %v1738_v53  ;;  %v2643_v0 = vpack.c.bf16 %v388_v58, %v384_v56  ;;  %v80_v2 = vld [vmem:[%s3467_s3 + $0x140] sm:$0xff]  ;;  %v1758_v51 = vpack.c.bf16 %v55_v47, %v51_v46  ;;  %v50_v53 = vld [vmem:[%s3467_s3 + $0x50] sm:$0xff] }
  0x16   :  { %v85_v60 = vld [vmem:[%s3467_s3 + $0x168] sm:$0xff]  ;;  %v84_v3 = vld [vmem:[%s3467_s3 + $0x160] sm:$0xff]  ;;  %1741 = vmatpush1.bf16.msra.mxu1 %v1740_v63  ;;  %v54_v54 = vld [vmem:[%s3467_s3 + $0x70] sm:$0xff] }
  0x17   :  { %v393_v61 = vld [vmem:[%s3468_s4 + $0x148] sm:$0xff]  ;;  %v1742_v1 = vpack.c.bf16 %v85_v60, %v81_v59  ;;  %v392_v4 = vld [vmem:[%s3468_s4 + $0x140] sm:$0xff]  ;;  %1803 = vmatprep.subr.bf16.mxu0 %v2625_v57  ;;  %v1744_v14 = vpack.c.bf16 %v84_v3, %v80_v2  ;;  %v59_v55 = vld [vmem:[%s3467_s3 + $0x98] sm:$0xff]  ;;  %v1760_v58 = vpack.c.bf16 %v54_v54, %v50_v53 }
  0x18   :  { %v397_v62 = vld [vmem:[%s3468_s4 + $0x168] sm:$0xff]  ;;  %v396_v6 = vld [vmem:[%s3468_s4 + $0x160] sm:$0xff]  ;;  %1805 = vmatpush1.bf16.msra.mxu0 %v2643_v0  ;;  %v63_v56 = vld [vmem:[%s3467_s3 + $0xb8] sm:$0xff] }
  0x19   :  { %v2655_v5 = vpack.c.bf16 %v397_v62, %v393_v61  ;;  %v89_v8 = vld [vmem:[%s3467_s3 + $0x188] sm:$0xff]  ;;  %1743 = vmatprep.subr.bf16.mxu1 %v1742_v1  ;;  %v2673_v15 = vpack.c.bf16 %v396_v6, %v392_v4  ;;  %v88_v17 = vld [vmem:[%s3467_s3 + $0x180] sm:$0xff]  ;;  %v1762_v60 = vpack.c.bf16 %v63_v56, %v59_v55  ;;  %v58_v61 = vld [vmem:[%s3467_s3 + $0x90] sm:$0xff] }
  0x1a   :  { %v93_v10 = vld [vmem:[%s3467_s3 + $0x1a8] sm:$0xff]  ;;  %v92_v18 = vld [vmem:[%s3467_s3 + $0x1a0] sm:$0xff]  ;;  %1745 = vmatpush1.bf16.msra.mxu1 %v1744_v14  ;;  %v62_v62 = vld [vmem:[%s3467_s3 + $0xb0] sm:$0xff] }
  0x1b   :  { %v401_v11 = vld [vmem:[%s3468_s4 + $0x188] sm:$0xff]  ;;  %v1746_v16 = vpack.c.bf16 %v93_v10, %v89_v8  ;;  %v400_v19 = vld [vmem:[%s3468_s4 + $0x180] sm:$0xff]  ;;  %1807 = vmatprep.subr.bf16.mxu0 %v2655_v5  ;;  %v1748_v28 = vpack.c.bf16 %v92_v18, %v88_v17  ;;  %v67_v63 = vld [vmem:[%s3467_s3 + $0xd8] sm:$0xff]  ;;  %v1764_v2 = vpack.c.bf16 %v62_v62, %v58_v61 }
  0x1c   :  { %v405_v12 = vld [vmem:[%s3468_s4 + $0x1a8] sm:$0xff]  ;;  %v404_v21 = vld [vmem:[%s3468_s4 + $0x1a0] sm:$0xff]  ;;  %1809 = vmatpush1.bf16.msra.mxu0 %v2673_v15  ;;  %v71_v1 = vld [vmem:[%s3467_s3 + $0xf8] sm:$0xff] }
  0x1d   :  { %v2685_v20 = vpack.c.bf16 %v405_v12, %v401_v11  ;;  %v97_v23 = vld [vmem:[%s3467_s3 + $0x1c8] sm:$0xff]  ;;  %1747 = vmatprep.subr.bf16.mxu1 %v1746_v16  ;;  %v2703_v29 = vpack.c.bf16 %v404_v21, %v400_v19  ;;  %v96_v31 = vld [vmem:[%s3467_s3 + $0x1c0] sm:$0xff]  ;;  %v2794_v3 = vld [vmem:[%s3464_s0 + $0x10] sm:$0xff]  ;;  %v1766_v4 = vpack.c.bf16 %v71_v1, %v67_v63 }
  0x1e   :  { %v101_v24 = vld [vmem:[%s3467_s3 + $0x1e8] sm:$0xff]  ;;  %v100_v32 = vld [vmem:[%s3467_s3 + $0x1e0] sm:$0xff]  ;;  %1749 = vmatpush1.bf16.msra.mxu1 %v1748_v28  ;;  %v66_v6 = vld [vmem:[%s3467_s3 + $0xd0] sm:$0xff] }
  0x1f   :  { %v409_v25 = vld [vmem:[%s3468_s4 + $0x1c8] sm:$0xff]  ;;  %v1750_v30 = vpack.c.bf16 %v101_v24, %v97_v23  ;;  %v408_v33 = vld [vmem:[%s3468_s4 + $0x1c0] sm:$0xff]  ;;  %1811 = vmatprep.subr.bf16.mxu0 %v2685_v20  ;;  %v1752_v40 = vpack.c.bf16 %v100_v32, %v96_v31  ;;  %v70_v8 = vld [vmem:[%s3467_s3 + $0xf0] sm:$0xff] }
  0x20   :  { %v413_v27 = vld [vmem:[%s3468_s4 + $0x1e8] sm:$0xff]  ;;  %v412_v36 = vld [vmem:[%s3468_s4 + $0x1e0] sm:$0xff]  ;;  %1813 = vmatpush1.bf16.msra.mxu0 %v2703_v29  ;;  %v75_v10 = vld [vmem:[%s3467_s3 + $0x118] sm:$0xff]  ;;  %v1768_v12 = vpack.c.bf16 %v70_v8, %v66_v6 }
  0x21   :  { %v2715_v34 = vpack.c.bf16 %v413_v27, %v409_v25  ;;  %1751 = vmatprep.subr.bf16.mxu1 %v1750_v30  ;;  %v2727_v41 = vpack.c.bf16 %v412_v36, %v408_v33  ;;  %v2745_v48 = vld [vmem:[%s3464_s0] sm:$0xff]  ;;  %v2771_v59 = vld [vmem:[%s3464_s0 + $0x8] sm:$0xff]  ;;  %v79_v11 = vld [vmem:[%s3467_s3 + $0x138] sm:$0xff] }
  0x22   :  { %1753 = vmatpush1.bf16.msra.mxu1 %v1752_v40  ;;  %v2751_v50 = vld [vmem:[%s3465_s1] sm:$0xff]  ;;  %v2815_v14 = vld [vmem:[%s3464_s0 + $0x18] sm:$0xff]  ;;  %v1770_v16 = vpack.c.bf16 %v79_v11, %v75_v10  ;;  %v74_v17 = vld [vmem:[%s3467_s3 + $0x110] sm:$0xff] }
  0x23   :  { %1815 = vmatprep.subr.bf16.mxu0 %v2715_v34  ;;  %1755 = vmatprep.subr.bf16.mxu1 %v1754_v42  ;;  %v78_v18 = vld [vmem:[%s3467_s3 + $0x130] sm:$0xff] }
  0x24   :  { %1817 = vmatpush1.bf16.msra.mxu0 %v2727_v41 }
  0x25   :  { %1851 = vmatprep.subr.bf16.mxu0 %v2503_v9  ;;  %191 = vmatmul.mubr.f32.vlgmr.msra.gmra.mrb[0].mxu1 %v2745_v48 }
  0x26   :  { %1757 = vmatpush1.bf16.msra.mxu1 %v1756_v49  ;;  %196 = vmatprep.mubr.f32.mxu1 %v2422_v7 }
  0x27   :  { %490 = vmatmul.mubr.f32.vlgmr.msra.gmra.mrb[0].mxu0 %v2751_v50  ;;  %1759 = vmatprep.subr.bf16.mxu1 %v1758_v51 }
  0x28   :  { %1853 = vmatpush1.bf16.msra.mxu0 %v2514_v13  ;;  %667 = vmatprep.mubr.f32.mxu0 %v2422_v7 }
  0x29   :  { %197 = vmatmul.mubr.f32.gmra.mrb[2].mxu1 %v2771_v59  ;;  %1855 = vmatprep.subr.bf16.mxu0 %v2536_v22 }
  0x2a   :  { %1761 = vmatpush1.bf16.msra.mxu1 %v1760_v58  ;;  %202 = vmatprep.mubr.f32.mxu1 %v2422_v7 }
  0x2b   :  { %1763 = vmatprep.subr.bf16.mxu1 %v1762_v60 }
  0x2c   :  { %1857 = vmatpush1.bf16.msra.mxu0 %v2547_v26 }
  0x2d   :  { %203 = vmatmul.mubr.f32.gmra.mrb[4].mxu1 %v2794_v3  ;;  %1859 = vmatprep.subr.bf16.mxu0 %v2568_v35 }
  0x2e   :  { %1765 = vmatpush1.bf16.msra.mxu1 %v1764_v2  ;;  %208 = vmatprep.mubr.f32.mxu1 %v2422_v7 }
  0x2f   :  { %1767 = vmatprep.subr.bf16.mxu1 %v1766_v4 }
  0x30   :  { %17 = vsyncpa [#allocation7], 0  ;;  %v83_v19 = vld [vmem:[%s3467_s3 + $0x158] sm:$0xff]  ;;  %1861 = vmatpush1.bf16.msra.mxu0 %v2580_v39  ;;  %v1772_v23 = vpack.c.bf16 %v78_v18, %v74_v17  ;;  %v2836_v24 = vld [vmem:[%s3464_s0 + $0x20] sm:$0xff] }
  0x31   :  { %v87_v21 = vld [vmem:[%s3467_s3 + $0x178] sm:$0xff]  ;;  %209 = vmatmul.mubr.f32.gmra.mrb[6].mxu1 %v2815_v14  ;;  %1863 = vmatprep.subr.bf16.mxu0 %v2592_v44  ;;  %v82_v27 = vld [vmem:[%s3467_s3 + $0x150] sm:$0xff]  ;;  %v2857_v33 = vld [vmem:[%s3464_s0 + $0x28] sm:$0xff] }
  0x32   :  { %1769 = vmatpush1.bf16.msra.mxu1 %v1768_v12  ;;  %214 = vmatprep.mubr.f32.mxu1 %v2422_v7  ;;  %v1774_v25 = vpack.c.bf16 %v87_v21, %v83_v19  ;;  %v86_v28 = vld [vmem:[%s3467_s3 + $0x170] sm:$0xff]  ;;  %v91_v30 = vld [vmem:[%s3467_s3 + $0x198] sm:$0xff] }
  0x33   :  { %1771 = vmatprep.subr.bf16.mxu1 %v1770_v16  ;;  %v95_v31 = vld [vmem:[%s3467_s3 + $0x1b8] sm:$0xff]  ;;  %v1776_v32 = vpack.c.bf16 %v86_v28, %v82_v27  ;;  %v90_v37 = vld [vmem:[%s3467_s3 + $0x190] sm:$0xff] }
  0x34   :  { %1865 = vmatpush1.bf16.msra.mxu0 %v2613_v52  ;;  %v1778_v36 = vpack.c.bf16 %v95_v31, %v91_v30  ;;  %v94_v38 = vld [vmem:[%s3467_s3 + $0x1b0] sm:$0xff]  ;;  %v99_v40 = vld [vmem:[%s3467_s3 + $0x1d8] sm:$0xff] }
  0x35   :  { %215 = vmatmul.mubr.f32.gmra.mrb[8].mxu1 %v2836_v24  ;;  %1867 = vmatprep.subr.bf16.mxu0 %v2625_v57  ;;  %v103_v42 = vld [vmem:[%s3467_s3 + $0x1f8] sm:$0xff]  ;;  %v1780_v43 = vpack.c.bf16 %v94_v38, %v90_v37  ;;  %v98_v46 = vld [vmem:[%s3467_s3 + $0x1d0] sm:$0xff] }
  0x36   :  { %1773 = vmatpush1.bf16.msra.mxu1 %v1772_v23  ;;  %220 = vmatprep.mubr.f32.mxu1 %v2422_v7  ;;  %v1782_v45 = vpack.c.bf16 %v103_v42, %v99_v40  ;;  %v102_v47 = vld [vmem:[%s3467_s3 + $0x1f0] sm:$0xff]  ;;  %v355_v49 = vld [vmem:[%s3468_s4 + $0x18] sm:$0xff] }
  0x37   :  { %1775 = vmatprep.subr.bf16.mxu1 %v1774_v25  ;;  %v359_v51 = vld [vmem:[%s3468_s4 + $0x38] sm:$0xff]  ;;  %v1784_v53 = vpack.c.bf16 %v102_v47, %v98_v46  ;;  %v354_v55 = vld [vmem:[%s3468_s4 + $0x10] sm:$0xff] }
  0x38   :  { %1869 = vmatpush1.bf16.msra.mxu0 %v2643_v0  ;;  %v2889_v54 = vpack.c.bf16 %v359_v51, %v355_v49  ;;  %v358_v56 = vld [vmem:[%s3468_s4 + $0x30] sm:$0xff]  ;;  %v363_v58 = vld [vmem:[%s3468_s4 + $0x58] sm:$0xff] }
  0x39   :  { %221 = vmatmul.mubr.f32.gmra.mrb[10].mxu1 %v2857_v33  ;;  %1871 = vmatprep.subr.bf16.mxu0 %v2655_v5  ;;  %v367_v60 = vld [vmem:[%s3468_s4 + $0x78] sm:$0xff]  ;;  %v2905_v61 = vpack.c.bf16 %v358_v56, %v354_v55  ;;  %v362_v63 = vld [vmem:[%s3468_s4 + $0x50] sm:$0xff] }
  0x3a   :  { %1777 = vmatpush1.bf16.msra.mxu1 %v1776_v32  ;;  %291 = vmatprep.mubr.f32.mxu1 %v2422_v7  ;;  %v2908_v62 = vpack.c.bf16 %v367_v60, %v363_v58  ;;  %v366_v1 = vld [vmem:[%s3468_s4 + $0x70] sm:$0xff]  ;;  %v371_v2 = vld [vmem:[%s3468_s4 + $0x98] sm:$0xff]  ;;  %v104_v58 = vld [vmem:[%s3469_s5] sm:$0xf] }
  0x3b   :  { %1779 = vmatprep.subr.bf16.mxu1 %v1778_v36  ;;  %v375_v4 = vld [vmem:[%s3468_s4 + $0xb8] sm:$0xff]  ;;  %v2926_v6 = vpack.c.bf16 %v366_v1, %v362_v63  ;;  %v370_v10 = vld [vmem:[%s3468_s4 + $0x90] sm:$0xff] }
  0x3c   :  { %1873 = vmatpush1.bf16.msra.mxu0 %v2673_v15  ;;  %v2930_v8 = vpack.c.bf16 %v375_v4, %v371_v2  ;;  %v379_v11 = vld [vmem:[%s3468_s4 + $0xd8] sm:$0xff]  ;;  %v378_v18 = vld [vmem:[%s3468_s4 + $0xd0] sm:$0xff] }
  0x3d   :  { %1875 = vmatprep.subr.bf16.mxu0 %v2685_v20  ;;  %v383_v12 = vld [vmem:[%s3468_s4 + $0xf8] sm:$0xff]  ;;  %v382_v19 = vld [vmem:[%s3468_s4 + $0xf0] sm:$0xff] }
  0x3e   :  { %1781 = vmatpush1.bf16.msra.mxu1 %v1780_v43  ;;  %v2950_v17 = vpack.c.bf16 %v383_v12, %v379_v11  ;;  %v391_v21 = vld [vmem:[%s3468_s4 + $0x138] sm:$0xff]  ;;  %v2966_v23 = vpack.c.bf16 %v382_v19, %v378_v18  ;;  %v386_v27 = vld [vmem:[%s3468_s4 + $0x110] sm:$0xff] }
  0x3f   :  { %1783 = vmatprep.subr.bf16.mxu1 %v1782_v45  ;;  %v390_v28 = vld [vmem:[%s3468_s4 + $0x130] sm:$0xff]  ;;  %v399_v30 = vld [vmem:[%s3468_s4 + $0x178] sm:$0xff] }
  0x40   :  { %1877 = vmatpush1.bf16.msra.mxu0 %v2703_v29  ;;  %v2986_v31 = vpack.c.bf16 %v390_v28, %v386_v27  ;;  %v394_v36 = vld [vmem:[%s3468_s4 + $0x150] sm:$0xff]  ;;  %v407_v38 = vld [vmem:[%s3468_s4 + $0x1b8] sm:$0xff] }
  0x41   :  { %1879 = vmatprep.subr.bf16.mxu0 %v2715_v34  ;;  %v398_v37 = vld [vmem:[%s3468_s4 + $0x170] sm:$0xff]  ;;  %v415_v46 = vld [vmem:[%s3468_s4 + $0x1f8] sm:$0xff] }
  0x42   :  { %1785 = vmatpush1.bf16.msra.mxu1 %v1784_v53  ;;  %v3006_v40 = vpack.c.bf16 %v398_v37, %v394_v36  ;;  %v402_v43 = vld [vmem:[%s3468_s4 + $0x190] sm:$0xff] }
  0x43   :  { %1819 = vmatprep.subr.bf16.mxu1 %v2889_v54  ;;  %v406_v45 = vld [vmem:[%s3468_s4 + $0x1b0] sm:$0xff] }
  0x44   :  { %1881 = vmatpush1.bf16.msra.mxu0 %v2727_v41  ;;  %v3026_v47 = vpack.c.bf16 %v406_v45, %v402_v43  ;;  %v410_v51 = vld [vmem:[%s3468_s4 + $0x1d0] sm:$0xff] }
  0x45   :  { %292 = vmatmul.mubr.f32.vlgmr.msra.gmra.mrb[12].mxu1 %v2745_v48  ;;  %1915 = vmatprep.subr.bf16.mxu0 %v2503_v9  ;;  %v374_v48 = vld [vmem:[%s3468_s4 + $0xb0] sm:$0xff] }
  0x46   :  { %1821 = vmatpush1.bf16.msra.mxu1 %v2905_v61  ;;  %297 = vmatprep.mubr.f32.mxu1 %v2422_v7  ;;  %v2946_v16 = vpack.c.bf16 %v374_v48, %v370_v10  ;;  %v414_v53 = vld [vmem:[%s3468_s4 + $0x1f0] sm:$0xff] }
  0x47   :  { %1823 = vmatprep.subr.bf16.mxu1 %v2908_v62 }
  0x49   :  { %298 = vmatmul.mubr.f32.gmra.mrb[14].mxu1 %v2771_v59  ;;  %v387_v59 = vld [vmem:[%s3468_s4 + $0x118] sm:$0xff] }
  0x4a   :  { %1825 = vmatpush1.bf16.msra.mxu1 %v2926_v6  ;;  %303 = vmatprep.mubr.f32.mxu1 %v2422_v7  ;;  %v2970_v25 = vpack.c.bf16 %v391_v21, %v387_v59 }
  0x4b   :  { %1827 = vmatprep.subr.bf16.mxu1 %v2930_v8 }
  0x4d   :  { %304 = vmatmul.mubr.f32.gmra.mrb[16].mxu1 %v2794_v3  ;;  %v395_v3 = vld [vmem:[%s3468_s4 + $0x158] sm:$0xff] }
  0x4e   :  { %1829 = vmatpush1.bf16.msra.mxu1 %v2946_v16  ;;  %309 = vmatprep.mubr.f32.mxu1 %v2422_v7  ;;  %v2990_v32 = vpack.c.bf16 %v399_v30, %v395_v3 }
  0x4f   :  { %1831 = vmatprep.subr.bf16.mxu1 %v2950_v17 }
  0x51   :  { %310 = vmatmul.mubr.f32.gmra.mrb[18].mxu1 %v2815_v14  ;;  %v403_v14 = vld [vmem:[%s3468_s4 + $0x198] sm:$0xff] }
  0x52   :  { %1833 = vmatpush1.bf16.msra.mxu1 %v2966_v23  ;;  %315 = vmatprep.mubr.f32.mxu1 %v2422_v7  ;;  %v3010_v42 = vpack.c.bf16 %v407_v38, %v403_v14 }
  0x53   :  { %1835 = vmatprep.subr.bf16.mxu1 %v2970_v25 }
  0x55   :  { %316 = vmatmul.mubr.f32.gmra.mrb[20].mxu1 %v2836_v24  ;;  %v411_v24 = vld [vmem:[%s3468_s4 + $0x1d8] sm:$0xff] }
  0x56   :  { %1837 = vmatpush1.bf16.msra.mxu1 %v2986_v31  ;;  %321 = vmatprep.mubr.f32.mxu1 %v2422_v7  ;;  %v3030_v49 = vpack.c.bf16 %v415_v46, %v411_v24 }
  0x57   :  { %1839 = vmatprep.subr.bf16.mxu1 %v2990_v32 }
  0x59   :  { %322 = vmatmul.mubr.f32.gmra.mrb[22].mxu1 %v2857_v33  ;;  %v3039_v33 = vpack.c.bf16 %v414_v53, %v410_v51 }
  0x5a   :  { %1841 = vmatpush1.bf16.msra.mxu1 %v3006_v40  ;;  %560 = vmatprep.mubr.f32.mxu1 %v2422_v7 }
  0x5b   :  { %1843 = vmatprep.subr.bf16.mxu1 %v3010_v42 }
  0x5e   :  { %1845 = vmatpush1.bf16.msra.mxu1 %v3026_v47 }
  0x5f   :  { %1847 = vmatprep.subr.bf16.mxu1 %v3030_v49 }
  0x62   :  { %1849 = vmatpush1.bf16.msra.mxu1 %v3039_v33 }
  0x63   :  { %1883 = vmatprep.subr.bf16.mxu1 %v2889_v54 }
  0x65   :  { %561 = vmatmul.mubr.f32.vlgmr.msra.gmra.mrb[12].mxu1 %v2751_v50  ;;  %v106_v50 = vlaneseq }
  0x66   :  { %1885 = vmatpush1.bf16.msra.mxu1 %v2905_v61  ;;  %738 = vmatprep.mubr.f32.mxu1 %v2422_v7 }
  0x67   :  { %1887 = vmatprep.subr.bf16.mxu1 %v2908_v62  ;;  %v3062_v55 = vshrl.u32 %v106_v50, 7 }
  0x69   :  { %v108_v56 = vsub.s32 0, %v3062_v55  ;;  %v3475_v60 = vsub.s32 1, %v3062_v55 }
  0x6a   :  { %1889 = vmatpush1.bf16.msra.mxu1 %v2926_v6 }
  0x6b   :  { %1891 = vmatprep.subr.bf16.mxu1 %v2930_v8  ;;  %v109_v63 = vrot.slane %v104_v58, %v108_v56  ;;  %v113_v1 = vrot.slane %v104_v58, %v3475_v60 }
  0x6e   :  { %1893 = vmatpush1.bf16.msra.mxu1 %v2946_v16 }
  0x6f   :  { %1895 = vmatprep.subr.bf16.mxu1 %v2950_v17 }
  0x72   :  { %1897 = vmatpush1.bf16.msra.mxu1 %v2966_v23 }
  0x73   :  { %1899 = vmatprep.subr.bf16.mxu1 %v2970_v25 }
  0x76   :  { %1901 = vmatpush1.bf16.msra.mxu1 %v2986_v31 }
  0x77   :  { %1903 = vmatprep.subr.bf16.mxu1 %v2990_v32 }
  0x7a   :  { %1905 = vmatpush1.bf16.msra.mxu1 %v3006_v40 }
  0x7b   :  { %1907 = vmatprep.subr.bf16.mxu1 %v3010_v42 }
  0x7e   :  { %1909 = vmatpush1.bf16.msra.mxu1 %v3026_v47 }
  0x7f   :  { %1911 = vmatprep.subr.bf16.mxu1 %v3030_v49 }
  0x82   :  { %1913 = vmatpush1.bf16.msra.mxu1 %v3039_v33 }
  0x83   :  { %1947 = vmatprep.subr.bf16.mxu1 %v2889_v54 }
  0xf8   :  { %v192_v2 = vpop.f32.mrb[0].mxu1 }
  0xf9   :  { %v193_v4 = vadd.f32 %v192_v2, %v109_v63  ;;  %v194_v10 = vpop.f32.mrb[1].mxu1 }
  0xfa   :  { %v491_v48 = vpop.f32.mrb[0].mxu0  ;;  %v195_v11 = vadd.f32 %v194_v10, %v113_v1 }
  0xfb   :  { %v493_v12 = vpop.f32.mrb[1].mxu0  ;;  %v567_v18 = vadd.f32 %v491_v48, %v193_v4 }
  0xfc   :  { %v568_v19 = vadd.f32 %v493_v12, %v195_v11  ;;  %v198_v59 = vpop.f32.mrb[2].mxu1  ;;  %v116_v12 = vsub.s32 2, %v3062_v55 }
  0xfd   :  { %v3073_v21 = vadd.f32 %v198_v59, %v109_v63  ;;  %v200_v27 = vpop.f32.mrb[3].mxu1  ;;  %v1704_v11 = vmul.f32 -1.442695, %v567_v18 }
  0xfe   :  { %v3075_v28 = vadd.f32 %v200_v27, %v113_v1  ;;  %v1705_v48 = vmul.f32 -1.442695, %v568_v19  ;;  %v120_v27 = vsub.s32 3, %v3062_v55 }
 0x100   :  { %v204_v3 = vpop.f32.mrb[4].mxu1  ;;  %2256 = vpow2.f32 %v1705_v48 }
 0x101   :  { %v3077_v30 = vadd.f32 %v204_v3, %v109_v63  ;;  %v206_v36 = vpop.f32.mrb[5].mxu1  ;;  %2258 = vpow2.f32 %v1704_v11 }
 0x102   :  { %v3079_v37 = vadd.f32 %v206_v36, %v113_v1 }
 0x104   :  { %v210_v14 = vpop.f32.mrb[6].mxu1 }
 0x105   :  { %v3081_v38 = vadd.f32 %v210_v14, %v109_v63  ;;  %v212_v43 = vpop.f32.mrb[7].mxu1  ;;  %v3095_v14 = vrot.slane %v104_v58, %v116_v12 }
 0x106   :  { %v3083_v45 = vadd.f32 %v212_v43, %v113_v1 }
 0x108   :  { %v216_v24 = vpop.f32.mrb[8].mxu1 }
 0x109   :  { %v3085_v46 = vadd.f32 %v216_v24, %v109_v63  ;;  %v218_v51 = vpop.f32.mrb[9].mxu1  ;;  %v3097_v24 = vrot.slane %v104_v58, %v120_v27 }
 0x10a   :  { %v3087_v53 = vadd.f32 %v218_v51, %v113_v1  ;;  %v2257_v59 = vpop.eup %2256 }
 0x10b   :  { %v2259_v3 = vpop.eup %2258  ;;  %v578_v36 = vadd.f32 1.0, %v2257_v59 }
 0x10c   :  { %v222_v50 = vpop.f32.mrb[10].mxu1  ;;  %v577_v43 = vadd.f32 1.0, %v2259_v3 }
 0x10d   :  { %v3089_v2 = vadd.f32 %v222_v50, %v109_v63  ;;  %v224_v4 = vpop.f32.mrb[11].mxu1  ;;  %2260 = vrcp.f32 %v578_v36 }
 0x10e   :  { %v3091_v10 = vadd.f32 %v224_v4, %v113_v1  ;;  %2262 = vrcp.f32 %v577_v43  ;;  %v417_v4 = vld [vmem:[%s3466_s2] sm:$0xff] }
 0x117   :  { %v2261_v50 = vpop.eup %2260 }
 0x118   :  { %v2263_v48 = vpop.eup %2262  ;;  %v590_v58 = vmul.f32 %v2261_v50, %v417_v4 }
 0x138   :  { %v562_v63 = vpop.f32.mrb[12].mxu1 }
 0x139   :  { %v2226_v1 = vadd.f32 %v562_v63, %v3095_v14  ;;  %v564_v19 = vpop.f32.mrb[13].mxu1 }
 0x13a   :  { %v2227_v18 = vadd.f32 %v564_v19, %v3097_v24 }
 0x13b   :  { %2264 = vtanh.f32 %v2226_v1 }
 0x13c   :  { %v1706_v51 = vmul.f32 -1.442695, %v2227_v18 }
 0x13e   :  { %2266 = vpow2.f32 %v1706_v51 }
 0x145   :  { %v2265_v11 = vpop.eup %2264 }
 0x146   :  { %v591_v12 = vmul.f32 %v2265_v11, %v2263_v48 }
 0x148   :  { %v2267_v59 = vpop.eup %2266  ;;  %v3104_v27 = vadd.f32 %v591_v12, %v590_v58 }
 0x149   :  { %v587_v3 = vadd.f32 1.0, %v2267_v59 }
 0x14a   :  { %2268 = vtanh.f32 %v3104_v27 }
 0x14b   :  { %2270 = vrcp.f32 %v587_v3 }
 0x154   :  { %v2269_v36 = vpop.eup %2268 }
 0x155   :  { %v2271_v43 = vpop.eup %2270 }
 0x156   :  { %v3107_v63 = vmul.f32 %v2271_v43, %v2269_v36 }
 0x158   :  { %668 = vmatmul.mubr.f32.vlgmr.msra.gmra.mrb[2].mxu0 %v3107_v63  ;;  %739 = vmatmul.mubr.f32.vlgmr.msra.gmra.mrb[14].mxu1 %v3107_v63 }
 0x159   :  { %1917 = vmatpush1.bf16.msra.mxu0 %v2514_v13  ;;  %1949 = vmatpush1.bf16.msra.mxu1 %v2905_v61 }
 0x15a   :  { %1919 = vmatprep.subr.bf16.mxu0 %v2536_v22  ;;  %1951 = vmatprep.subr.bf16.mxu1 %v2908_v62 }
 0x15b   :  { %846 = vmatprep.mubr.f32.mxu0 %v2422_v7  ;;  %917 = vmatprep.mubr.f32.mxu1 %v2422_v7 }
 0x15d   :  { %1921 = vmatpush1.bf16.msra.mxu0 %v2547_v26  ;;  %1953 = vmatpush1.bf16.msra.mxu1 %v2926_v6 }
 0x15e   :  { %1923 = vmatprep.subr.bf16.mxu0 %v2568_v35  ;;  %1955 = vmatprep.subr.bf16.mxu1 %v2930_v8 }
 0x161   :  { %1925 = vmatpush1.bf16.msra.mxu0 %v2580_v39  ;;  %1957 = vmatpush1.bf16.msra.mxu1 %v2946_v16 }
 0x162   :  { %1927 = vmatprep.subr.bf16.mxu0 %v2592_v44  ;;  %1959 = vmatprep.subr.bf16.mxu1 %v2950_v17 }
 0x165   :  { %1929 = vmatpush1.bf16.msra.mxu0 %v2613_v52  ;;  %1961 = vmatpush1.bf16.msra.mxu1 %v2966_v23 }
 0x166   :  { %1931 = vmatprep.subr.bf16.mxu0 %v2625_v57  ;;  %1963 = vmatprep.subr.bf16.mxu1 %v2970_v25 }
 0x169   :  { %1933 = vmatpush1.bf16.msra.mxu0 %v2643_v0  ;;  %1965 = vmatpush1.bf16.msra.mxu1 %v2986_v31 }
 0x16a   :  { %1935 = vmatprep.subr.bf16.mxu0 %v2655_v5  ;;  %1967 = vmatprep.subr.bf16.mxu1 %v2990_v32 }
 0x16d   :  { %1937 = vmatpush1.bf16.msra.mxu0 %v2673_v15  ;;  %1969 = vmatpush1.bf16.msra.mxu1 %v3006_v40 }
 0x16e   :  { %1939 = vmatprep.subr.bf16.mxu0 %v2685_v20  ;;  %1971 = vmatprep.subr.bf16.mxu1 %v3010_v42 }
 0x171   :  { %1941 = vmatpush1.bf16.msra.mxu0 %v2703_v29  ;;  %1973 = vmatpush1.bf16.msra.mxu1 %v3026_v47 }
 0x172   :  { %1943 = vmatprep.subr.bf16.mxu0 %v2715_v34  ;;  %1975 = vmatprep.subr.bf16.mxu1 %v3030_v49 }
 0x175   :  { %1945 = vmatpush1.bf16.msra.mxu0 %v2727_v41  ;;  %1977 = vmatpush1.bf16.msra.mxu1 %v3039_v33 }
 0x176   :  { %1979 = vmatprep.subr.bf16.mxu0 %v2503_v9  ;;  %2011 = vmatprep.subr.bf16.mxu1 %v2889_v54 }
 0x22b   :  { %v669_v1 = vpop.f32.mrb[2].mxu0  ;;  %v740_v19 = vpop.f32.mrb[14].mxu1 }
 0x22c   :  { %v745_v18 = vadd.f32 %v669_v1, %v3073_v21  ;;  %v671_v51 = vpop.f32.mrb[3].mxu0  ;;  %v742_v50 = vpop.f32.mrb[15].mxu1  ;;  %v2228_v59 = vadd.f32 %v740_v19, %v3095_v14 }
 0x22d   :  { %v746_v4 = vadd.f32 %v671_v51, %v3075_v28  ;;  %v2229_v58 = vadd.f32 %v742_v50, %v3097_v24 }
 0x22e   :  { %v1707_v48 = vmul.f32 -1.442695, %v745_v18 }
 0x22f   :  { %v1708_v11 = vmul.f32 -1.442695, %v746_v4  ;;  %v1709_v12 = vmul.f32 -1.442695, %v2229_v58 }
 0x230   :  { %2272 = vpow2.f32 %v1707_v48 }
 0x231   :  { %2274 = vpow2.f32 %v1708_v11 }
 0x232   :  { %2276 = vpow2.f32 %v1709_v12 }
 0x233   :  { %2278 = vtanh.f32 %v2228_v59 }
 0x23a   :  { %v2273_v3 = vpop.eup %2272 }
 0x23b   :  { %v2275_v36 = vpop.eup %2274  ;;  %v755_v43 = vadd.f32 1.0, %v2273_v3 }
 0x23c   :  { %v756_v60 = vadd.f32 1.0, %v2275_v36  ;;  %v2277_v21 = vpop.eup %2276 }
 0x23d   :  { %2280 = vrcp.f32 %v755_v43  ;;  %v2279_v1 = vpop.eup %2278  ;;  %v765_v4 = vadd.f32 1.0, %v2277_v21 }
 0x23e   :  { %2282 = vrcp.f32 %v756_v60 }
 0x23f   :  { %2284 = vrcp.f32 %v765_v4 }
 0x247   :  { %v2281_v28 = vpop.eup %2280 }
 0x248   :  { %v2283_v18 = vpop.eup %2282  ;;  %v769_v51 = vmul.f32 %v2281_v28, %v2279_v1 }
 0x249   :  { %v768_v48 = vmul.f32 %v2283_v18, %v3104_v27  ;;  %v2285_v19 = vpop.eup %2284 }
 0x24b   :  { %v3150_v50 = vadd.f32 %v769_v51, %v768_v48 }
 0x24d   :  { %2286 = vtanh.f32 %v3150_v50 }
 0x257   :  { %v2287_v11 = vpop.eup %2286 }
 0x258   :  { %v3153_v58 = vmul.f32 %v2287_v11, %v2285_v19 }
 0x25a   :  { %847 = vmatmul.mubr.f32.vlgmr.msra.gmra.mrb[4].mxu0 %v3153_v58  ;;  %918 = vmatmul.mubr.f32.vlgmr.msra.gmra.mrb[16].mxu1 %v3153_v58 }
 0x25b   :  { %1981 = vmatpush1.bf16.msra.mxu0 %v2514_v13  ;;  %2013 = vmatpush1.bf16.msra.mxu1 %v2905_v61 }
 0x25c   :  { %1983 = vmatprep.subr.bf16.mxu0 %v2536_v22  ;;  %2015 = vmatprep.subr.bf16.mxu1 %v2908_v62 }
 0x25d   :  { %1025 = vmatprep.mubr.f32.mxu0 %v2422_v7  ;;  %1096 = vmatprep.mubr.f32.mxu1 %v2422_v7 }
 0x25f   :  { %1985 = vmatpush1.bf16.msra.mxu0 %v2547_v26  ;;  %2017 = vmatpush1.bf16.msra.mxu1 %v2926_v6 }
 0x260   :  { %1987 = vmatprep.subr.bf16.mxu0 %v2568_v35  ;;  %2019 = vmatprep.subr.bf16.mxu1 %v2930_v8 }
 0x263   :  { %1989 = vmatpush1.bf16.msra.mxu0 %v2580_v39  ;;  %2021 = vmatpush1.bf16.msra.mxu1 %v2946_v16 }
 0x264   :  { %1991 = vmatprep.subr.bf16.mxu0 %v2592_v44  ;;  %2023 = vmatprep.subr.bf16.mxu1 %v2950_v17 }
 0x267   :  { %1993 = vmatpush1.bf16.msra.mxu0 %v2613_v52  ;;  %2025 = vmatpush1.bf16.msra.mxu1 %v2966_v23 }
 0x268   :  { %1995 = vmatprep.subr.bf16.mxu0 %v2625_v57  ;;  %2027 = vmatprep.subr.bf16.mxu1 %v2970_v25 }
 0x26b   :  { %1997 = vmatpush1.bf16.msra.mxu0 %v2643_v0  ;;  %2029 = vmatpush1.bf16.msra.mxu1 %v2986_v31 }
 0x26c   :  { %1999 = vmatprep.subr.bf16.mxu0 %v2655_v5  ;;  %2031 = vmatprep.subr.bf16.mxu1 %v2990_v32 }
 0x26f   :  { %2001 = vmatpush1.bf16.msra.mxu0 %v2673_v15  ;;  %2033 = vmatpush1.bf16.msra.mxu1 %v3006_v40 }
 0x270   :  { %2003 = vmatprep.subr.bf16.mxu0 %v2685_v20  ;;  %2035 = vmatprep.subr.bf16.mxu1 %v3010_v42 }
 0x273   :  { %2005 = vmatpush1.bf16.msra.mxu0 %v2703_v29  ;;  %2037 = vmatpush1.bf16.msra.mxu1 %v3026_v47 }
 0x274   :  { %2007 = vmatprep.subr.bf16.mxu0 %v2715_v34  ;;  %2039 = vmatprep.subr.bf16.mxu1 %v3030_v49 }
 0x277   :  { %2009 = vmatpush1.bf16.msra.mxu0 %v2727_v41  ;;  %2041 = vmatpush1.bf16.msra.mxu1 %v3039_v33 }
 0x278   :  { %2043 = vmatprep.subr.bf16.mxu0 %v2503_v9  ;;  %2075 = vmatprep.subr.bf16.mxu1 %v2889_v54 }
 0x32d   :  { %v848_v60 = vpop.f32.mrb[4].mxu0  ;;  %v919_v27 = vpop.f32.mrb[16].mxu1 }
 0x32e   :  { %v924_v12 = vadd.f32 %v848_v60, %v3077_v30  ;;  %v850_v59 = vpop.f32.mrb[5].mxu0  ;;  %v921_v3 = vpop.f32.mrb[17].mxu1  ;;  %v2230_v18 = vadd.f32 %v919_v27, %v3095_v14 }
 0x32f   :  { %v925_v36 = vadd.f32 %v850_v59, %v3079_v37  ;;  %v2231_v1 = vadd.f32 %v921_v3, %v3097_v24 }
 0x330   :  { %v1710_v43 = vmul.f32 -1.442695, %v924_v12 }
 0x331   :  { %v1711_v21 = vmul.f32 -1.442695, %v925_v36  ;;  %v1712_v28 = vmul.f32 -1.442695, %v2231_v1 }
 0x332   :  { %2288 = vpow2.f32 %v1710_v43 }
 0x333   :  { %2290 = vpow2.f32 %v1711_v21 }
 0x334   :  { %2292 = vpow2.f32 %v1712_v28 }
 0x335   :  { %2294 = vtanh.f32 %v2230_v18 }
 0x33c   :  { %v2289_v51 = vpop.eup %2288 }
 0x33d   :  { %v2291_v4 = vpop.eup %2290  ;;  %v934_v48 = vadd.f32 1.0, %v2289_v51 }
 0x33e   :  { %v935_v19 = vadd.f32 1.0, %v2291_v4  ;;  %v2293_v30 = vpop.eup %2292 }
 0x33f   :  { %2296 = vrcp.f32 %v934_v48  ;;  %v2295_v11 = vpop.eup %2294  ;;  %v944_v59 = vadd.f32 1.0, %v2293_v30 }
 0x340   :  { %2298 = vrcp.f32 %v935_v19 }
 0x341   :  { %2300 = vrcp.f32 %v944_v59 }
 0x349   :  { %v2297_v37 = vpop.eup %2296 }
 0x34a   :  { %v2299_v60 = vpop.eup %2298  ;;  %v948_v12 = vmul.f32 %v2297_v37, %v2295_v11 }
 0x34b   :  { %v947_v36 = vmul.f32 %v2299_v60, %v3150_v50  ;;  %v2301_v27 = vpop.eup %2300 }
 0x34d   :  { %v3196_v3 = vadd.f32 %v948_v12, %v947_v36 }
 0x34f   :  { %2302 = vtanh.f32 %v3196_v3 }
 0x359   :  { %v2303_v43 = vpop.eup %2302 }
 0x35a   :  { %v3199_v21 = vmul.f32 %v2303_v43, %v2301_v27 }
 0x35c   :  { %1026 = vmatmul.mubr.f32.vlgmr.msra.gmra.mrb[6].mxu0 %v3199_v21  ;;  %1097 = vmatmul.mubr.f32.vlgmr.msra.gmra.mrb[18].mxu1 %v3199_v21 }
 0x35d   :  { %2045 = vmatpush1.bf16.msra.mxu0 %v2514_v13  ;;  %2077 = vmatpush1.bf16.msra.mxu1 %v2905_v61 }
 0x35e   :  { %2047 = vmatprep.subr.bf16.mxu0 %v2536_v22  ;;  %2079 = vmatprep.subr.bf16.mxu1 %v2908_v62 }
 0x35f   :  { %1204 = vmatprep.mubr.f32.mxu0 %v2422_v7  ;;  %1275 = vmatprep.mubr.f32.mxu1 %v2422_v7 }
 0x361   :  { %2049 = vmatpush1.bf16.msra.mxu0 %v2547_v26  ;;  %2081 = vmatpush1.bf16.msra.mxu1 %v2926_v6 }
 0x362   :  { %2051 = vmatprep.subr.bf16.mxu0 %v2568_v35  ;;  %2083 = vmatprep.subr.bf16.mxu1 %v2930_v8 }
 0x365   :  { %2053 = vmatpush1.bf16.msra.mxu0 %v2580_v39  ;;  %2085 = vmatpush1.bf16.msra.mxu1 %v2946_v16 }
 0x366   :  { %2055 = vmatprep.subr.bf16.mxu0 %v2592_v44  ;;  %2087 = vmatprep.subr.bf16.mxu1 %v2950_v17 }
 0x369   :  { %2057 = vmatpush1.bf16.msra.mxu0 %v2613_v52  ;;  %2089 = vmatpush1.bf16.msra.mxu1 %v2966_v23 }
 0x36a   :  { %2059 = vmatprep.subr.bf16.mxu0 %v2625_v57  ;;  %2091 = vmatprep.subr.bf16.mxu1 %v2970_v25 }
 0x36d   :  { %2061 = vmatpush1.bf16.msra.mxu0 %v2643_v0  ;;  %2093 = vmatpush1.bf16.msra.mxu1 %v2986_v31 }
 0x36e   :  { %2063 = vmatprep.subr.bf16.mxu0 %v2655_v5  ;;  %2095 = vmatprep.subr.bf16.mxu1 %v2990_v32 }
 0x371   :  { %2065 = vmatpush1.bf16.msra.mxu0 %v2673_v15  ;;  %2097 = vmatpush1.bf16.msra.mxu1 %v3006_v40 }
 0x372   :  { %2067 = vmatprep.subr.bf16.mxu0 %v2685_v20  ;;  %2099 = vmatprep.subr.bf16.mxu1 %v3010_v42 }
 0x375   :  { %2069 = vmatpush1.bf16.msra.mxu0 %v2703_v29  ;;  %2101 = vmatpush1.bf16.msra.mxu1 %v3026_v47 }
 0x376   :  { %2071 = vmatprep.subr.bf16.mxu0 %v2715_v34  ;;  %2103 = vmatprep.subr.bf16.mxu1 %v3030_v49 }
 0x379   :  { %2073 = vmatpush1.bf16.msra.mxu0 %v2727_v41  ;;  %2105 = vmatpush1.bf16.msra.mxu1 %v3039_v33 }
 0x37a   :  { %2107 = vmatprep.subr.bf16.mxu0 %v2503_v9  ;;  %2139 = vmatprep.subr.bf16.mxu1 %v2889_v54 }
 0x42f   :  { %v1027_v50 = vpop.f32.mrb[6].mxu0  ;;  %v1098_v1 = vpop.f32.mrb[18].mxu1 }
 0x430   :  { %v1103_v28 = vadd.f32 %v1027_v50, %v3081_v38  ;;  %v1029_v18 = vpop.f32.mrb[7].mxu0  ;;  %v1100_v51 = vpop.f32.mrb[19].mxu1  ;;  %v2232_v37 = vadd.f32 %v1098_v1, %v3095_v14 }
 0x431   :  { %v1104_v4 = vadd.f32 %v1029_v18, %v3083_v45  ;;  %v2233_v30 = vadd.f32 %v1100_v51, %v3097_v24 }
 0x432   :  { %v1713_v48 = vmul.f32 -1.442695, %v1103_v28 }
 0x433   :  { %v1714_v19 = vmul.f32 -1.442695, %v1104_v4  ;;  %v1715_v11 = vmul.f32 -1.442695, %v2233_v30  ;;  %v1503_v30 = vld [vmem:[%s3470_s6 + $0x30] sm:$0xff] }
 0x434   :  { %2304 = vpow2.f32 %v1713_v48 }
 0x435   :  { %2306 = vpow2.f32 %v1714_v19  ;;  %v1501_v19 = vld [vmem:[%s3470_s6 + $0x20] sm:$0xff] }
 0x436   :  { %2308 = vpow2.f32 %v1715_v11  ;;  %v1506_v11 = vld [vmem:[%s3470_s6 + $0x48] sm:$0xff] }
 0x437   :  { %2310 = vtanh.f32 %v2232_v37  ;;  %v1508_v37 = vld [vmem:[%s3470_s6 + $0x58] sm:$0xff] }
 0x43e   :  { %v2305_v9 = vpop.eup %2304 }
 0x43f   :  { %v2307_v60 = vpop.eup %2306  ;;  %v1113_v54 = vadd.f32 1.0, %v2305_v9  ;;  %v2176_v9 = vpack.c.bf16 %v1503_v30, %v1501_v19 }
 0x440   :  { %v1114_v12 = vadd.f32 1.0, %v2307_v60  ;;  %v2309_v38 = vpop.eup %2308  ;;  %v2178_v60 = vpack.c.bf16 %v1508_v37, %v1506_v11  ;;  %v3476_v11 = vsub.s32 1, %v3062_v55 }
 0x441   :  { %2312 = vrcp.f32 %v1113_v54  ;;  %v2311_v59 = vpop.eup %2310  ;;  %v1123_v43 = vadd.f32 1.0, %v2309_v38  ;;  %v1505_v54 = vld [vmem:[%s3470_s6 + $0x40] sm:$0xff]  ;;  %v1510_v38 = vld [vmem:[%s3470_s6 + $0x68] sm:$0xff] }
 0x442   :  { %2314 = vrcp.f32 %v1114_v12  ;;  %v1507_v12 = vld [vmem:[%s3470_s6 + $0x50] sm:$0xff] }
 0x443   :  { %2316 = vrcp.f32 %v1123_v43  ;;  %v1511_v43 = vld [vmem:[%s3470_s6 + $0x70] sm:$0xff] }
 0x44b   :  { %v2313_v45 = vpop.eup %2312 }
 0x44c   :  { %v2315_v36 = vpop.eup %2314  ;;  %v1127_v27 = vmul.f32 %v2313_v45, %v2311_v59  ;;  %v1512_v59 = vld [vmem:[%s3470_s6 + $0x78] sm:$0xff]  ;;  %v2180_v45 = vpack.c.bf16 %v1507_v12, %v1505_v54 }
 0x44d   :  { %v1126_v50 = vmul.f32 %v2315_v36, %v3196_v3  ;;  %v2317_v1 = vpop.eup %2316  ;;  %v2182_v36 = vpack.c.bf16 %v1512_v59, %v1510_v38 }
 0x44f   :  { %v3242_v28 = vadd.f32 %v1127_v27, %v1126_v50  ;;  %v1509_v27 = vld [vmem:[%s3470_s6 + $0x60] sm:$0xff]  ;;  %v1514_v50 = vld [vmem:[%s3470_s6 + $0x88] sm:$0xff] }
 0x451   :  { %2318 = vtanh.f32 %v3242_v28 }
 0x45b   :  { %v2319_v18 = vpop.eup %2318 }
 0x45c   :  { %v3245_v51 = vmul.f32 %v2319_v18, %v2317_v1  ;;  %v2184_v1 = vpack.c.bf16 %v1511_v43, %v1509_v27 }
 0x45e   :  { %1205 = vmatmul.mubr.f32.vlgmr.msra.gmra.mrb[8].mxu0 %v3245_v51  ;;  %1276 = vmatmul.mubr.f32.vlgmr.msra.gmra.mrb[20].mxu1 %v3245_v51 }
 0x45f   :  { %2109 = vmatpush1.bf16.msra.mxu0 %v2514_v13  ;;  %2141 = vmatpush1.bf16.msra.mxu1 %v2905_v61  ;;  %v1498_v13 = vld [vmem:[%s3470_s6 + $0x8] sm:$0xff] }
 0x460   :  { %2111 = vmatprep.subr.bf16.mxu0 %v2536_v22  ;;  %2143 = vmatprep.subr.bf16.mxu1 %v2908_v62  ;;  %v1500_v22 = vld [vmem:[%s3470_s6 + $0x18] sm:$0xff] }
 0x461   :  { %1383 = vmatprep.mubr.f32.mxu0 %v2422_v7  ;;  %1454 = vmatprep.mubr.f32.mxu1 %v2422_v7 }
 0x463   :  { %2113 = vmatpush1.bf16.msra.mxu0 %v2547_v26  ;;  %2145 = vmatpush1.bf16.msra.mxu1 %v2926_v6  ;;  %v2170_v26 = vpack.c.bf16 %v1500_v22, %v1498_v13  ;;  %v1513_v13 = vld [vmem:[%s3470_s6 + $0x80] sm:$0xff]  ;;  %v1515_v22 = vld [vmem:[%s3470_s6 + $0x90] sm:$0xff] }
 0x464   :  { %2115 = vmatprep.subr.bf16.mxu0 %v2568_v35  ;;  %2147 = vmatprep.subr.bf16.mxu1 %v2930_v8 }
 0x467   :  { %2117 = vmatpush1.bf16.msra.mxu0 %v2580_v39  ;;  %2149 = vmatpush1.bf16.msra.mxu1 %v2946_v16 }
 0x468   :  { %2119 = vmatprep.subr.bf16.mxu0 %v2592_v44  ;;  %2151 = vmatprep.subr.bf16.mxu1 %v2950_v17 }
 0x46b   :  { %2121 = vmatpush1.bf16.msra.mxu0 %v2613_v52  ;;  %2153 = vmatpush1.bf16.msra.mxu1 %v2966_v23 }
 0x46c   :  { %2123 = vmatprep.subr.bf16.mxu0 %v2625_v57  ;;  %2155 = vmatprep.subr.bf16.mxu1 %v2970_v25 }
 0x46f   :  { %2125 = vmatpush1.bf16.msra.mxu0 %v2643_v0  ;;  %2157 = vmatpush1.bf16.msra.mxu1 %v2986_v31 }
 0x470   :  { %2127 = vmatprep.subr.bf16.mxu0 %v2655_v5  ;;  %2159 = vmatprep.subr.bf16.mxu1 %v2990_v32 }
 0x473   :  { %2129 = vmatpush1.bf16.msra.mxu0 %v2673_v15  ;;  %2161 = vmatpush1.bf16.msra.mxu1 %v3006_v40 }
 0x474   :  { %2131 = vmatprep.subr.bf16.mxu0 %v2685_v20  ;;  %2163 = vmatprep.subr.bf16.mxu1 %v3010_v42  ;;  %v1497_v42 = vld [vmem:[%s3470_s6] sm:$0xff] }
 0x477   :  { %2133 = vmatpush1.bf16.msra.mxu0 %v2703_v29  ;;  %2165 = vmatpush1.bf16.msra.mxu1 %v3026_v47  ;;  %v1499_v47 = vld [vmem:[%s3470_s6 + $0x10] sm:$0xff] }
 0x478   :  { %2135 = vmatprep.subr.bf16.mxu0 %v2715_v34  ;;  %2167 = vmatprep.subr.bf16.mxu1 %v3030_v49  ;;  %v1502_v49 = vld [vmem:[%s3470_s6 + $0x28] sm:$0xff]  ;;  %v2172_v3 = vpack.c.bf16 %v1499_v47, %v1497_v42 }
 0x47b   :  { %2137 = vmatpush1.bf16.msra.mxu0 %v2727_v41  ;;  %2169 = vmatpush1.bf16.msra.mxu1 %v3039_v33  ;;  %v1504_v33 = vld [vmem:[%s3470_s6 + $0x38] sm:$0xff] }
 0x47c   :  { %2171 = vmatprep.subr.bf16.mxu0 %v2170_v26  ;;  %v2174_v48 = vpack.c.bf16 %v1504_v33, %v1502_v49  ;;  %v1518_v26 = vld [vmem:[%s3470_s6 + $0xa8] sm:$0xff] }
 0x531   :  { %v1206_v35 = vpop.f32.mrb[8].mxu0  ;;  %v1277_v39 = vpop.f32.mrb[20].mxu1 }
 0x532   :  { %v1282_v44 = vadd.f32 %v1206_v35, %v3085_v46  ;;  %v1208_v52 = vpop.f32.mrb[9].mxu0  ;;  %v1279_v57 = vpop.f32.mrb[21].mxu1  ;;  %v2234_v34 = vadd.f32 %v1277_v39, %v3095_v14  ;;  %v1520_v35 = vld [vmem:[%s3470_s6 + $0xb8] sm:$0xff]  ;;  %v2188_v39 = vpack.c.bf16 %v1515_v22, %v1513_v13 }
 0x533   :  { %v1283_v0 = vadd.f32 %v1208_v52, %v3087_v53  ;;  %v2235_v20 = vadd.f32 %v1279_v57, %v3097_v24  ;;  %v1517_v52 = vld [vmem:[%s3470_s6 + $0xa0] sm:$0xff]  ;;  %v1519_v57 = vld [vmem:[%s3470_s6 + $0xb0] sm:$0xff] }
 0x534   :  { %v1716_v5 = vmul.f32 -1.442695, %v1282_v44  ;;  %v2190_v44 = vpack.c.bf16 %v1520_v35, %v1518_v26 }
 0x535   :  { %v1717_v15 = vmul.f32 -1.442695, %v1283_v0  ;;  %v1718_v29 = vmul.f32 -1.442695, %v2235_v20  ;;  %v1522_v0 = vld [vmem:[%s3470_s6 + $0xc8] sm:$0xff] }
 0x536   :  { %2320 = vpow2.f32 %v1716_v5  ;;  %v1524_v5 = vld [vmem:[%s3470_s6 + $0xd8] sm:$0xff] }
 0x537   :  { %2322 = vpow2.f32 %v1717_v15  ;;  %v2192_v15 = vpack.c.bf16 %v1519_v57, %v1517_v52  ;;  %v2194_v20 = vpack.c.bf16 %v1524_v5, %v1522_v0 }
 0x538   :  { %2324 = vpow2.f32 %v1718_v29  ;;  %v1521_v29 = vld [vmem:[%s3470_s6 + $0xc0] sm:$0xff] }
 0x539   :  { %2326 = vtanh.f32 %v2234_v34  ;;  %v1523_v34 = vld [vmem:[%s3470_s6 + $0xd0] sm:$0xff] }
 0x540   :  { %v2321_v41 = vpop.eup %2320 }
 0x541   :  { %v2323_v61 = vpop.eup %2322  ;;  %v1292_v62 = vadd.f32 1.0, %v2321_v41  ;;  %v1526_v41 = vld [vmem:[%s3470_s6 + $0xe8] sm:$0xff] }
 0x542   :  { %v1293_v6 = vadd.f32 1.0, %v2323_v61  ;;  %v2325_v8 = vpop.eup %2324  ;;  %v1528_v61 = vld [vmem:[%s3470_s6 + $0xf8] sm:$0xff] }
 0x543   :  { %2328 = vrcp.f32 %v1292_v62  ;;  %v2327_v16 = vpop.eup %2326  ;;  %v1302_v31 = vadd.f32 1.0, %v2325_v8  ;;  %v2196_v62 = vpack.c.bf16 %v1523_v34, %v1521_v29  ;;  %v1525_v8 = vld [vmem:[%s3470_s6 + $0xe0] sm:$0xff] }
 0x544   :  { %2330 = vrcp.f32 %v1293_v6  ;;  %v2198_v6 = vpack.c.bf16 %v1528_v61, %v1526_v41 }
 0x545   :  { %2332 = vrcp.f32 %v1302_v31 }
 0x54d   :  { %v2329_v17 = vpop.eup %2328 }
 0x54e   :  { %v2331_v23 = vpop.eup %2330  ;;  %v1306_v25 = vmul.f32 %v2329_v17, %v2327_v16  ;;  %v1527_v16 = vld [vmem:[%s3470_s6 + $0xf0] sm:$0xff] }
 0x54f   :  { %v1305_v32 = vmul.f32 %v2331_v23, %v3242_v28  ;;  %v2333_v46 = vpop.eup %2332  ;;  %v1516_v28 = vld [vmem:[%s3470_s6 + $0x98] sm:$0xff]  ;;  %v2200_v17 = vpack.c.bf16 %v1527_v16, %v1525_v8 }
 0x550   :  { %v2186_v18 = vpack.c.bf16 %v1516_v28, %v1514_v50 }
 0x551   :  { %v3292_v40 = vadd.f32 %v1306_v25, %v1305_v32 }
 0x553   :  { %2334 = vtanh.f32 %v3292_v40 }
 0x55d   :  { %v2335_v53 = vpop.eup %2334 }
 0x55e   :  { %v3307_v4 = vmul.f32 %v2335_v53, %v2333_v46 }
 0x560   :  { %1384 = vmatmul.mubr.f32.vlgmr.msra.gmra.mrb[10].mxu0 %v3307_v4  ;;  %1455 = vmatmul.mubr.f32.vlgmr.msra.gmra.mrb[22].mxu1 %v3307_v4 }
 0x561   :  { %2173 = vmatpush1.bf16.msra.mxu0 %v2172_v3  ;;  %1605 = vmatprep.mubr.f32.mxu0 %v2422_v7 }
 0x562   :  { %2175 = vmatprep.subr.bf16.mxu0 %v2174_v48 }
 0x565   :  { %2177 = vmatpush1.bf16.msra.mxu0 %v2176_v9 }
 0x566   :  { %2179 = vmatprep.subr.bf16.mxu0 %v2178_v60 }
 0x569   :  { %2181 = vmatpush1.bf16.msra.mxu0 %v2180_v45 }
 0x56a   :  { %2183 = vmatprep.subr.bf16.mxu0 %v2182_v36 }
 0x56d   :  { %2185 = vmatpush1.bf16.msra.mxu0 %v2184_v1 }
 0x56e   :  { %2187 = vmatprep.subr.bf16.mxu0 %v2186_v18 }
 0x571   :  { %2189 = vmatpush1.bf16.msra.mxu0 %v2188_v39 }
 0x572   :  { %2191 = vmatprep.subr.bf16.mxu0 %v2190_v44 }
 0x575   :  { %2193 = vmatpush1.bf16.msra.mxu0 %v2192_v15 }
 0x576   :  { %2195 = vmatprep.subr.bf16.mxu0 %v2194_v20 }
 0x579   :  { %2197 = vmatpush1.bf16.msra.mxu0 %v2196_v62 }
 0x57a   :  { %2199 = vmatprep.subr.bf16.mxu0 %v2198_v6 }
 0x57d   :  { %2201 = vmatpush1.bf16.msra.mxu0 %v2200_v17 }
 0x580   :  { %1606 = vmatmul.mubr.f32.vlgmr.msra.gmra.mrb[12].mxu0 %v3107_v63 }
 0x581   :  { %1611 = vmatprep.mubr.f32.mxu0 %v2422_v7 }
 0x584   :  { %1612 = vmatmul.mubr.f32.gmra.mrb[14].mxu0 %v3153_v58 }
 0x585   :  { %1617 = vmatprep.mubr.f32.mxu0 %v2422_v7 }
 0x588   :  { %1618 = vmatmul.mubr.f32.gmra.mrb[16].mxu0 %v3199_v21 }
 0x589   :  { %1623 = vmatprep.mubr.f32.mxu0 %v2422_v7 }
 0x58c   :  { %1624 = vmatmul.mubr.f32.gmra.mrb[18].mxu0 %v3245_v51 }
 0x58d   :  { %1629 = vmatprep.mubr.f32.mxu0 %v2422_v7 }
 0x590   :  { %1630 = vmatmul.mubr.f32.gmra.mrb[20].mxu0 %v3307_v4 }
 0x591   :  { %1635 = vmatprep.mubr.f32.mxu0 %v2422_v7 }
 0x633   :  { %v1385_v23 = vpop.f32.mrb[10].mxu0  ;;  %v1456_v63 = vpop.f32.mrb[22].mxu1 }
 0x634   :  { %v1461_v25 = vadd.f32 %v1385_v23, %v3089_v2  ;;  %v1387_v31 = vpop.f32.mrb[11].mxu0  ;;  %v1458_v58 = vpop.f32.mrb[23].mxu1  ;;  %v2236_v49 = vadd.f32 %v1456_v63, %v3095_v14 }
 0x635   :  { %v1462_v32 = vadd.f32 %v1387_v31, %v3091_v10  ;;  %v2237_v51 = vadd.f32 %v1458_v58, %v3097_v24  ;;  %v1529_v10 = vld [vmem:[%s3471_s7] sm:$0x3]  ;;  %s2423_s7 = smov [#allocation6]  }
 0x636   :  { %v1719_v42 = vmul.f32 -1.442695, %v1461_v25  ;;  %v3409_v14 = vrot.slane %v1529_v10, %v108_v56  ;;  %v3414_v37 = vrot.slane %v1529_v10, %v3476_v11  ;;  %s1674_s23 = sshll.u32 %s2423_s7, 4  ;;  %s1675_s23 = int_to_ptr.vmem [resolvable:$true] %s1674_s23 }
 0x637   :  { %v1720_v21 = vmul.f32 -1.442695, %v1462_v32  ;;  %v1721_v47 = vmul.f32 -1.442695, %v2237_v51  ;;  %s2352_s24 = scalar_lea.vmem %s1675_s23, 128  ;;  %p2357_p1 = scmp.lt.s32.totalorder %s1675_s23, %s1675_s23 }
 0x638   :  { %2336 = vpow2.f32 %v1719_v42  ;;  %p2353_p0 = scmp.ne.s32.totalorder %s1675_s23, %s2352_s24  ;;  %p2358_p2 = scmp.lt.s32.totalorder %s2352_s24, %s2352_s24 }
 0x639   :  { %2338 = vpow2.f32 %v1720_v21 }
 0x63a   :  { %2340 = vpow2.f32 %v1721_v47  ;;  %p2359_p3 = por %p2358_p2, %p2357_p1 }
 0x63b   :  { %2342 = vtanh.f32 %v2236_v49 }
 0x63c   :  { %p2360_p4 = pnand %p2359_p3, %p2353_p0 }
 0x642   :  { %v2337_v33 = vpop.eup %2336 }
 0x643   :  { %v2339_v46 = vpop.eup %2338  ;;  %v1471_v7 = vadd.f32 1.0, %v2337_v33 }
 0x644   :  { %v1472_v53 = vadd.f32 1.0, %v2339_v46  ;;  %v2341_v2 = vpop.eup %2340 }
 0x645   :  { %2344 = vrcp.f32 %v1471_v7  ;;  %v2343_v3 = vpop.eup %2342  ;;  %v1481_v19 = vadd.f32 1.0, %v2341_v2 }
 0x646   :  { %2346 = vrcp.f32 %v1472_v53 }
 0x647   :  { %2348 = vrcp.f32 %v1481_v19 }
 0x64f   :  { %v2345_v4 = vpop.eup %2344 }
 0x650   :  { %v2347_v48 = vpop.eup %2346  ;;  %v1485_v24 = vmul.f32 %v2345_v4, %v2343_v3 }
 0x651   :  { %v1484_v30 = vmul.f32 %v2347_v48, %v3292_v40  ;;  %v2349_v50 = vpop.eup %2348 }
 0x653   :  { %v1607_v9 = vpop.f32.mrb[12].mxu0  ;;  %v1486_v60 = vadd.f32 %v1485_v24, %v1484_v30 }
 0x654   :  { %v1608_v54 = vadd.f32 %v1607_v9, %v3409_v14  ;;  %v1609_v12 = vpop.f32.mrb[13].mxu0 }
 0x655   :  { %v1610_v38 = vadd.f32 %v1609_v12, %v3414_v37  ;;  %2350 = vtanh.f32 %v1486_v60  ;;  %1655 = vst [vmem:[#allocation8] sm:$0xff] %v1486_v60 }
 0x656   :  { %1642 = vst [vmem:[#allocation4] sm:$0xff] %v1608_v54 }
 0x657   :  { %1643 = vst [vmem:[#allocation4 + $0x8] sm:$0xff] %v1610_v38  ;;  %v1613_v56 = vpop.f32.mrb[14].mxu0 }
 0x658   :  { %v1614_v59 = vadd.f32 %v1613_v56, %v3409_v14  ;;  %v1615_v40 = vpop.f32.mrb[15].mxu0 }
 0x659   :  { %v1616_v55 = vadd.f32 %v1615_v40, %v3414_v37 }
 0x65a   :  { %1644 = vst [vmem:[#allocation4 + $0x10] sm:$0xff] %v1614_v59 }
 0x65b   :  { %1645 = vst [vmem:[#allocation4 + $0x18] sm:$0xff] %v1616_v55  ;;  %v1619_v45 = vpop.f32.mrb[16].mxu0 }
 0x65c   :  { %v1620_v36 = vadd.f32 %v1619_v45, %v3409_v14  ;;  %v1621_v27 = vpop.f32.mrb[17].mxu0 }
 0x65d   :  { %v1622_v43 = vadd.f32 %v1621_v27, %v3414_v37 }
 0x65e   :  { %1646 = vst [vmem:[#allocation4 + $0x20] sm:$0xff] %v1620_v36 }
 0x65f   :  { %v2351_v28 = vpop.eup %2350  ;;  %1647 = vst [vmem:[#allocation4 + $0x28] sm:$0xff] %v1622_v43  ;;  %v1625_v1 = vpop.f32.mrb[18].mxu0 }
 0x660   :  { %v1626_v18 = vadd.f32 %v1625_v1, %v3409_v14  ;;  %v1627_v13 = vpop.f32.mrb[19].mxu0  ;;  %v1488_v22 = vmul.f32 %v2351_v28, %v2349_v50 }
 0x661   :  { %v1628_v26 = vadd.f32 %v1627_v13, %v3414_v37 }
 0x662   :  { %1648 = vst [vmem:[#allocation4 + $0x30] sm:$0xff] %v1626_v18  ;;  %1636 = vmatmul.mubr.f32.gmra.mrb[22].mxu0 %v1488_v22  ;;  %1654 = vst [vmem:[#allocation6] sm:$0xff] %v1488_v22 }
 0x663   :  { %1649 = vst [vmem:[#allocation4 + $0x38] sm:$0xff] %v1628_v26  ;;  %v1631_v35 = vpop.f32.mrb[20].mxu0 }
 0x664   :  { %v1632_v39 = vadd.f32 %v1631_v35, %v3409_v14  ;;  %v1633_v44 = vpop.f32.mrb[21].mxu0 }
 0x665   :  { %v1634_v52 = vadd.f32 %v1633_v44, %v3414_v37 }
 0x666   :  { %1650 = vst [vmem:[#allocation4 + $0x40] sm:$0xff] %v1632_v39 }
 0x667   :  { %1651 = vst [vmem:[#allocation4 + $0x48] sm:$0xff] %v1634_v52 }
 0x668   :  { %2363 = shalt.err (!%p2360_p4)
}
 0x669   :  { %s2364_s26 = scalar_lea.hbm %s3473_s9, 128 }
 0x66a   :  { %p2365_p5 = scmp.ne.s32.totalorder %s3473_s9, %s2364_s26  ;;  %p2368_p6 = scmp.lt.u32.totalorder %s2364_s26, %s3473_s9 }
 0x66c   :  { %p2370_p7 = pnand %p2368_p6, %p2365_p5 }
 0x66e   :  { %2373 = shalt.err (!%p2370_p7)
}
 0x66f   :  { %1677 = dma.vmem_to_hbm [thread:$0]  %s1675_s23, 128, %s3473_s9, [#allocation7]  }
 0x670   :  { %s2424_s5 = smov [#allocation8]  }
 0x671   :  { %s1684_s0 = sshll.u32 %s2424_s5, 4  ;;  %s1685_s0 = int_to_ptr.vmem [resolvable:$true] %s1684_s0 }
 0x672   :  { %s2374_s2 = scalar_lea.vmem %s1685_s0, 128  ;;  %p2379_p9 = scmp.lt.s32.totalorder %s1685_s0, %s1685_s0 }
 0x673   :  { %p2375_p8 = scmp.ne.s32.totalorder %s1685_s0, %s2374_s2  ;;  %p2380_p10 = scmp.lt.s32.totalorder %s2374_s2, %s2374_s2 }
 0x675   :  { %p2381_p11 = por %p2380_p10, %p2379_p9 }
 0x677   :  { %p2382_p12 = pnand %p2381_p11, %p2375_p8 }
 0x679   :  { %2385 = shalt.err (!%p2382_p12)
}
 0x67a   :  { %s2386_s14 = scalar_lea.hbm %s3474_s10, 128 }
 0x67b   :  { %p2387_p13 = scmp.ne.s32.totalorder %s3474_s10, %s2386_s14  ;;  %p2390_p0 = scmp.lt.u32.totalorder %s2386_s14, %s3474_s10 }
 0x67d   :  { %p2392_p1 = pnand %p2390_p0, %p2387_p13 }
 0x67f   :  { %2395 = shalt.err (!%p2392_p1)
}
 0x680   :  { %1687 = dma.vmem_to_hbm [thread:$0]  %s1685_s0, 128, %s3474_s10, [#allocation7]  }
 0x681   :  { %s2425_s20 = smov [#allocation4]  }
 0x682   :  { %s1661_s3 = sshll.u32 %s2425_s20, 4  ;;  %s1662_s3 = int_to_ptr.vmem [resolvable:$true] %s1661_s3 }
 0x683   :  { %s2396_s21 = scalar_lea.vmem %s1662_s3, 1536  ;;  %p2401_p3 = scmp.lt.s32.totalorder %s1662_s3, %s1662_s3 }
 0x684   :  { %p2397_p2 = scmp.ne.s32.totalorder %s1662_s3, %s2396_s21  ;;  %p2402_p4 = scmp.lt.s32.totalorder %s2396_s21, %s2396_s21 }
 0x686   :  { %p2403_p5 = por %p2402_p4, %p2401_p3 }
 0x688   :  { %p2404_p6 = pnand %p2403_p5, %p2397_p2 }
 0x735   :  { %v1637_v57 = vpop.f32.mrb[22].mxu0 }
 0x736   :  { %v1638_v0 = vadd.f32 %v1637_v57, %v3409_v14  ;;  %v1639_v5 = vpop.f32.mrb[23].mxu0 }
 0x737   :  { %v1640_v15 = vadd.f32 %v1639_v5, %v3414_v37 }
 0x738   :  { %1652 = vst [vmem:[#allocation4 + $0x50] sm:$0xff] %v1638_v0 }
 0x739   :  { %1653 = vst [vmem:[#allocation4 + $0x58] sm:$0xff] %v1640_v15 }
 0x73a   :  { %2407 = shalt.err (!%p2404_p6)
}
 0x73b   :  { %s2408_s22 = scalar_lea.hbm %s3472_s8, 1536 }
 0x73c   :  { %p2409_p7 = scmp.ne.s32.totalorder %s3472_s8, %s2408_s22  ;;  %p2412_p8 = scmp.lt.u32.totalorder %s2408_s22, %s3472_s8 }
 0x73e   :  { %p2414_p9 = pnand %p2412_p8, %p2409_p7 }
 0x740   :  { %2417 = shalt.err (!%p2414_p9)
}
 0x741   :  { %s2426_s25 = smov 256   ;;  %s2427_s26 = smov 16  }
 0x742   :  { %1667 = dma.vmem_to_hbm [thread:$0]  %s1662_s3, 1536, %s3472_s8, [#allocation5], %s2426_s25, %s2426_s25, %s2427_s26  }
 0x743   :  { %2418 = dma.done.wait [#allocation5], 1536  }
 0x744   :  { %2419 = vsyncadd [#allocation5], 4294965760 }
 0x745   :  { %2420 = dma.done.wait [#allocation7], 256  }
 0x746   :  { %2421 = vsyncadd [#allocation7], 4294967040 }
 0x747   :  { %1697 = vsyncpa [#allocation5], 1 }
 0x748   :  { %1698 = vsyncpa [#allocation7], 1 }

</bundles_post_ra>
